<compile_context>
chip_gen: v6e
topology: v6e:2x2x1
jax: 0.10.0
libtpu: 0.0.40
codegen_flags: <defaults>
</compile_context>

<pallas_src>
import numpy as np
import jax
import jax.numpy as jnp
from jax.experimental import pallas as pl
from jax.experimental.pallas import tpu as pltpu

# ---------------- model dims (small, consistent with the module) ----------------
VOCAB = 50        # input_dim
H = 32            # hidden_dim (also embedding dim)
OUT = 3           # output_dim
L = 2             # n_layers
B = 2             # batch
T = 8             # seq len
TFIDF = 100       # tfidf feature size (hard-coded +100 in the module)

# padded / aligned sizes
BP = 8            # batch padded to the f32 sublane count
G = 4 * H         # 128: gate vector is exactly one lane group
OUTP = 128        # fc output lanes padded -> lane-dense output store
TFIDFP = 128      # tfidf K dim padded to a full lane group


def sentiment_lstm_kernel(x_ref, mask_ref, wih_ref, whh_ref, b_ref,
                          tfidf_ref, fcw_h_ref, fcw_t_ref, fcb_ref,
                          out_ref, seq_ref):
    """Masked multi-layer LSTM recurrence + final FC, everything resident in VMEM."""
    # gate order along the 128 lanes is [i, f, g, o]; only g uses tanh.
    lane = jax.lax.broadcasted_iota(jnp.int32, (BP, G), 1)
    is_g = jnp.logical_and(lane >= 2 * H, lane < 3 * H)        # hoisted, constant

    h = jnp.zeros((BP, H), jnp.float32)
    for layer in range(L):
        wih = wih_ref[layer]                                   # (H, 4H)
        whh = whh_ref[layer]                                   # (H, 4H)

        # Hoisted input projection: one (T*BP, H) @ (H, 4H) matmul + bias,
        # instead of T tiny matmuls on the serial critical path.
        src = x_ref[...] if layer == 0 else seq_ref[...]       # (T, BP, H)
        gates_in = (jnp.dot(src.reshape(T * BP, H), wih,
                            preferred_element_type=jnp.float32)
                    + b_ref[layer]).reshape(T, BP, G)

        h = jnp.zeros((BP, H), jnp.float32)
        c = jnp.zeros((BP, H), jnp.float32)
        for t in range(T):
            # serial part: only the recurrent matmul
            # TODO(synk): cast the matmul operands here (and wih/whh/src above) to
            # bfloat16 on v6e/v7x (keep f32 accumulation + f32 gate math) once a
            # looser tolerance vs. the f32 reference is acceptable.
            gates = gates_in[t] + jnp.dot(h, whh,
                                          preferred_element_type=jnp.float32)
            # one sigmoid + one tanh on the full (8,128) vreg, lane-selected
            act = jnp.where(is_g, jnp.tanh(gates), jax.nn.sigmoid(gates))
            i_g = act[:, 0 * H:1 * H]
            f_g = act[:, 1 * H:2 * H]
            g_g = act[:, 2 * H:3 * H]
            o_g = act[:, 3 * H:4 * H]
            c_new = f_g * c + i_g * g_g
            h_new = o_g * jnp.tanh(c_new)
            m = mask_ref[t] > 0.5                              # (BP, H); 1 vcmp -> 2 vselects
            h = jnp.where(m, h_new, h)                         # freeze state on padded steps
            c = jnp.where(m, c_new, c)                         #   -> packed-sequence hidden[-1]
            if layer < L - 1:
                seq_ref[t] = h                                 # next layer's input

    # fc(cat(hidden, tfidf)) == hidden @ W_h + tfidf @ W_t + b  (all lane-dense, 128 wide)
    out_ref[...] = (jnp.dot(h, fcw_h_ref[...], preferred_element_type=jnp.float32)
                    + jnp.dot(tfidf_ref[...], fcw_t_ref[...],
                              preferred_element_type=jnp.float32)
                    + fcb_ref[...])


def _pad_to(x, shape):
    return jnp.pad(x, [(0, s - d) for d, s in zip(x.shape, shape)])


def sentiment_lstm_forward(input_ids, attention_mask, tfidf_vector, params):
    emb_table, wih, whh, bias, fcw_h, fcw_t, fcb = params
    b = input_ids.shape[0]
    assert b <= BP

    # glue (embedding gather, layout, zero padding) in plain JAX/XLA
    embedded = emb_table[input_ids]                            # (B, T, H)
    x_tbh = _pad_to(jnp.transpose(embedded, (1, 0, 2)), (T, BP, H))
    mask = attention_mask.astype(jnp.float32).T[:, :, None]    # (T, B, 1)
    mask = _pad_to(jnp.broadcast_to(mask, (T, b, H)), (T, BP, H))  # padded rows -> mask 0
    tfidf_p = _pad_to(tfidf_vector, (BP, TFIDFP))
    fcw_h_p = _pad_to(fcw_h, (H, OUTP))                        # in production, pad weights once
    fcw_t_p = _pad_to(fcw_t, (TFIDFP, OUTP))
    fcb_p = _pad_to(fcb, (1, OUTP))

    vmem = pl.BlockSpec(memory_space=pltpu.MemorySpace.VMEM)
    # TODO(synk): for real throughput, batch many sequences per call (BP >> 8) and add
    # a batch grid axis with dimension_semantics=("parallel",) to use both v7x TCs.
    out = pl.pallas_call(
        sentiment_lstm_kernel,
        out_shape=jax.ShapeDtypeStruct((BP, OUTP), jnp.float32),
        in_specs=[vmem] * 9,
        out_specs=vmem,
        scratch_shapes=[pltpu.VMEM((T, BP, H), jnp.float32)],
    )(x_tbh, mask, wih, whh, bias, tfidf_p, fcw_h_p, fcw_t_p, fcb_p)
    return out[:b, :OUT]


def reference_forward(input_ids, attention_mask, tfidf_vector, params):
    """Pure-JAX reference of the same masked-LSTM semantics (for validation)."""
    emb_table, wih, whh, bias, fcw_h, fcw_t, fcb = params
    seq = emb_table[input_ids]                                 # (B, T, H)
    mask = attention_mask.astype(jnp.float32)                  # (B, T)
    h = jnp.zeros((B, H), jnp.float32)
    for layer in range(L):
        h = jnp.zeros((B, H), jnp.float32)
        c = jnp.zeros((B, H), jnp.float32)
        outs = []
        for t in range(T):
            gates = seq[:, t, :] @ wih[layer] + h @ whh[layer] + bias[layer]
            i_g = jax.nn.sigmoid(gates[:, 0 * H:1 * H])
            f_g = jax.nn.sigmoid(gates[:, 1 * H:2 * H])
            g_g = jnp.tanh(gates[:, 2 * H:3 * H])
            o_g = jax.nn.sigmoid(gates[:, 3 * H:4 * H])
            c_new = f_g * c + i_g * g_g
            h_new = o_g * jnp.tanh(c_new)
            m = mask[:, t:t + 1]
            h = m * h_new + (1.0 - m) * h
            c = m * c_new + (1.0 - m) * c
            outs.append(h)
        seq = jnp.stack(outs, axis=1)
    return h @ fcw_h + tfidf_vector @ fcw_t + fcb


if __name__ == "__main__":
    key = jax.random.PRNGKey(0)
    k = jax.random.split(key, 10)

    # deterministic synthetic parameters (shapes implied by the module __init__)
    emb_table = 0.1 * jax.random.normal(k[0], (VOCAB, H), jnp.float32)
    wih = 0.1 * jax.random.normal(k[1], (L, H, 4 * H), jnp.float32)
    whh = 0.1 * jax.random.normal(k[2], (L, H, 4 * H), jnp.float32)
    bias = 0.1 * jax.random.normal(k[3], (L, 1, 4 * H), jnp.float32)   # b_ih + b_hh
    fcw_h = 0.1 * jax.random.normal(k[4], (H, OUT), jnp.float32)
    fcw_t = 0.1 * jax.random.normal(k[5], (TFIDF, OUT), jnp.float32)
    fcb = 0.1 * jax.random.normal(k[6], (1, OUT), jnp.float32)
    params = (emb_table, wih, whh, bias, fcw_h, fcw_t, fcb)

    # deterministic inputs
    input_ids = jax.random.randint(k[7], (B, T), 0, VOCAB)
    lengths = jnp.array([T, 5], dtype=jnp.int32)                        # left-aligned padding
    attention_mask = (jnp.arange(T)[None, :] < lengths[:, None]).astype(jnp.int32)  # (B, T)
    tfidf_vector = jax.random.normal(k[8], (B, TFIDF), jnp.float32)

    out = sentiment_lstm_forward(input_ids, attention_mask, tfidf_vector, params)
    out = jax.block_until_ready(out)

    ref = reference_forward(input_ids, attention_mask, tfidf_vector, params)
    np.testing.assert_allclose(np.asarray(out), np.asarray(ref), rtol=1e-4, atol=1e-4)

    print("KERNEL_OK")
</pallas_src>

<mosaic_0001>
module attributes {stable_mosaic.version = 11 : i64} {
  func.func @sentiment_lstm_kernel(%arg0: memref<8x8x32xf32, #tpu.memory_space<vmem>>, %arg1: memref<8x8x32xf32, #tpu.memory_space<vmem>>, %arg2: memref<2x32x128xf32, #tpu.memory_space<vmem>>, %arg3: memref<2x32x128xf32, #tpu.memory_space<vmem>>, %arg4: memref<2x1x128xf32, #tpu.memory_space<vmem>>, %arg5: memref<8x128xf32, #tpu.memory_space<vmem>>, %arg6: memref<32x128xf32, #tpu.memory_space<vmem>>, %arg7: memref<128x128xf32, #tpu.memory_space<vmem>>, %arg8: memref<1x128xf32, #tpu.memory_space<vmem>>, %arg9: memref<8x128xf32, #tpu.memory_space<vmem>>, %arg10: memref<8x8x32xf32, #tpu.memory_space<vmem>>) attributes {dimension_semantics = [], scalar_prefetch = 0 : i64, scratch_operands = 1 : i64, tpu.core_type = #tpu.core_type<tc>} {
    %0 = tpu.iota {dimensions = array<i32: 1>} : vector<8x128xi32>
    %c64_i32 = arith.constant 64 : i32
    %1 = vector.broadcast %c64_i32 : i32 to vector<8x128xi32>
    %2 = arith.cmpi sge, %0, %1 : vector<8x128xi32>
    %c96_i32 = arith.constant 96 : i32
    %3 = vector.broadcast %c96_i32 : i32 to vector<8x128xi32>
    %4 = arith.cmpi slt, %0, %3 : vector<8x128xi32>
    %5 = arith.andi %2, %4 : vector<8x128xi1>
    %c0 = arith.constant 0 : index
    %c0_0 = arith.constant 0 : index
    %c0_1 = arith.constant 0 : index
    %6 = vector.load %arg2[%c0, %c0_0, %c0_1] : memref<2x32x128xf32, #tpu.memory_space<vmem>>, vector<1x32x128xf32>
    %7 = vector.shape_cast %6 : vector<1x32x128xf32> to vector<32x128xf32>
    %c0_2 = arith.constant 0 : index
    %c0_3 = arith.constant 0 : index
    %c0_4 = arith.constant 0 : index
    %8 = vector.load %arg3[%c0_2, %c0_3, %c0_4] : memref<2x32x128xf32, #tpu.memory_space<vmem>>, vector<1x32x128xf32>
    %9 = vector.shape_cast %8 : vector<1x32x128xf32> to vector<32x128xf32>
    %c0_5 = arith.constant 0 : index
    %c0_6 = arith.constant 0 : index
    %c0_7 = arith.constant 0 : index
    %10 = vector.load %arg0[%c0_5, %c0_6, %c0_7] : memref<8x8x32xf32, #tpu.memory_space<vmem>>, vector<8x8x32xf32>
    %11 = vector.shape_cast %10 : vector<8x8x32xf32> to vector<64x32xf32>
    %cst = arith.constant dense<0.000000e+00> : vector<64x128xf32>
    %12 = tpu.matmul %11, %7, %cst {dimension_numbers = #tpu.dot_dimension_numbers<[1], [0], [0], [1], [0, 0, 1, 1], [], []>} : vector<64x32xf32>, vector<32x128xf32>, vector<64x128xf32> -> vector<64x128xf32>
    %c0_8 = arith.constant 0 : index
    %c0_9 = arith.constant 0 : index
    %c0_10 = arith.constant 0 : index
    %13 = vector.load %arg4[%c0_8, %c0_9, %c0_10] : memref<2x1x128xf32, #tpu.memory_space<vmem>>, vector<1x1x128xf32>
    %14 = vector.shape_cast %13 : vector<1x1x128xf32> to vector<1x128xf32>
    %15 = vector.broadcast %14 : vector<1x128xf32> to vector<64x128xf32>
    %16 = arith.addf %12, %15 : vector<64x128xf32>
    %17 = vector.shape_cast %16 : vector<64x128xf32> to vector<8x8x128xf32>
    %cst_11 = arith.constant 0.000000e+00 : f32
    %18 = vector.broadcast %cst_11 : f32 to vector<8x32xf32>
    %cst_12 = arith.constant 0.000000e+00 : f32
    %19 = vector.broadcast %cst_12 : f32 to vector<8x32xf32>
    %20 = vector.extract_strided_slice %17 {offsets = [0, 0, 0], sizes = [1, 8, 128], strides = [1, 1, 1]} : vector<8x8x128xf32> to vector<1x8x128xf32>
    %21 = vector.shape_cast %20 : vector<1x8x128xf32> to vector<8x128xf32>
    %cst_13 = arith.constant dense<0.000000e+00> : vector<8x128xf32>
    %22 = tpu.matmul %18, %9, %cst_13 {dimension_numbers = #tpu.dot_dimension_numbers<[1], [0], [0], [1], [0, 0, 1, 1], [], []>} : vector<8x32xf32>, vector<32x128xf32>, vector<8x128xf32> -> vector<8x128xf32>
    %23 = arith.addf %21, %22 : vector<8x128xf32>
    %24 = math.tanh %23 : vector<8x128xf32>
    %25 = arith.negf %23 : vector<8x128xf32>
    %26 = math.exp %25 : vector<8x128xf32>
    %cst_14 = arith.constant 1.000000e+00 : f32
    %27 = vector.broadcast %cst_14 : f32 to vector<8x128xf32>
    %28 = arith.addf %27, %26 : vector<8x128xf32>
    %29 = arith.divf %27, %28 : vector<8x128xf32>
    %30 = arith.select %5, %24, %29 : vector<8x128xi1>, vector<8x128xf32>
    %31 = vector.extract_strided_slice %30 {offsets = [0, 0], sizes = [8, 32], strides = [1, 1]} : vector<8x128xf32> to vector<8x32xf32>
    %32 = vector.extract_strided_slice %30 {offsets = [0, 32], sizes = [8, 32], strides = [1, 1]} : vector<8x128xf32> to vector<8x32xf32>
    %33 = vector.extract_strided_slice %30 {offsets = [0, 64], sizes = [8, 32], strides = [1, 1]} : vector<8x128xf32> to vector<8x32xf32>
    %34 = vector.extract_strided_slice %30 {offsets = [0, 96], sizes = [8, 32], strides = [1, 1]} : vector<8x128xf32> to vector<8x32xf32>
    %35 = arith.mulf %32, %19 : vector<8x32xf32>
    %36 = arith.mulf %31, %33 : vector<8x32xf32>
    %37 = arith.addf %35, %36 : vector<8x32xf32>
    %38 = math.tanh %37 : vector<8x32xf32>
    %39 = arith.mulf %34, %38 : vector<8x32xf32>
    %c0_15 = arith.constant 0 : index
    %c0_16 = arith.constant 0 : index
    %c0_17 = arith.constant 0 : index
    %40 = vector.load %arg1[%c0_15, %c0_16, %c0_17] : memref<8x8x32xf32, #tpu.memory_space<vmem>>, vector<1x8x32xf32>
    %41 = vector.shape_cast %40 : vector<1x8x32xf32> to vector<8x32xf32>
    %cst_18 = arith.constant 5.000000e-01 : f32
    %42 = vector.broadcast %cst_18 : f32 to vector<8x32xf32>
    %43 = arith.cmpf ogt, %41, %42 : vector<8x32xf32>
    %44 = arith.select %43, %39, %18 : vector<8x32xi1>, vector<8x32xf32>
    %45 = arith.select %43, %37, %19 : vector<8x32xi1>, vector<8x32xf32>
    %c0_19 = arith.constant 0 : index
    %c0_20 = arith.constant 0 : index
    %c0_21 = arith.constant 0 : index
    %46 = vector.load %arg10[%c0_19, %c0_20, %c0_21] : memref<8x8x32xf32, #tpu.memory_space<vmem>>, vector<1x8x32xf32>
    %47 = vector.shape_cast %46 : vector<1x8x32xf32> to vector<8x32xf32>
    %48 = vector.shape_cast %44 : vector<8x32xf32> to vector<1x8x32xf32>
    tpu.vector_store %arg10[%c0_19, %c0_20, %c0_21], %48 {strides = array<i32>} : memref<8x8x32xf32, #tpu.memory_space<vmem>>, vector<1x8x32xf32>,
    %49 = vector.extract_strided_slice %17 {offsets = [1, 0, 0], sizes = [1, 8, 128], strides = [1, 1, 1]} : vector<8x8x128xf32> to vector<1x8x128xf32>
    %50 = vector.shape_cast %49 : vector<1x8x128xf32> to vector<8x128xf32>
    %cst_22 = arith.constant dense<0.000000e+00> : vector<8x128xf32>
    %51 = tpu.matmul %44, %9, %cst_22 {dimension_numbers = #tpu.dot_dimension_numbers<[1], [0], [0], [1], [0, 0, 1, 1], [], []>} : vector<8x32xf32>, vector<32x128xf32>, vector<8x128xf32> -> vector<8x128xf32>
    %52 = arith.addf %50, %51 : vector<8x128xf32>
    %53 = math.tanh %52 : vector<8x128xf32>
    %54 = arith.negf %52 : vector<8x128xf32>
    %55 = math.exp %54 : vector<8x128xf32>
    %cst_23 = arith.constant 1.000000e+00 : f32
    %56 = vector.broadcast %cst_23 : f32 to vector<8x128xf32>
    %57 = arith.addf %56, %55 : vector<8x128xf32>
    %58 = arith.divf %56, %57 : vector<8x128xf32>
    %59 = arith.select %5, %53, %58 : vector<8x128xi1>, vector<8x128xf32>
    %60 = vector.extract_strided_slice %59 {offsets = [0, 0], sizes = [8, 32], strides = [1, 1]} : vector<8x128xf32> to vector<8x32xf32>
    %61 = vector.extract_strided_slice %59 {offsets = [0, 32], sizes = [8, 32], strides = [1, 1]} : vector<8x128xf32> to vector<8x32xf32>
    %62 = vector.extract_strided_slice %59 {offsets = [0, 64], sizes = [8, 32], strides = [1, 1]} : vector<8x128xf32> to vector<8x32xf32>
    %63 = vector.extract_strided_slice %59 {offsets = [0, 96], sizes = [8, 32], strides = [1, 1]} : vector<8x128xf32> to vector<8x32xf32>
    %64 = arith.mulf %61, %45 : vector<8x32xf32>
    %65 = arith.mulf %60, %62 : vector<8x32xf32>
    %66 = arith.addf %64, %65 : vector<8x32xf32>
    %67 = math.tanh %66 : vector<8x32xf32>
    %68 = arith.mulf %63, %67 : vector<8x32xf32>
    %c1 = arith.constant 1 : index
    %c0_24 = arith.constant 0 : index
    %c0_25 = arith.constant 0 : index
    %69 = vector.load %arg1[%c1, %c0_24, %c0_25] : memref<8x8x32xf32, #tpu.memory_space<vmem>>, vector<1x8x32xf32>
    %70 = vector.shape_cast %69 : vector<1x8x32xf32> to vector<8x32xf32>
    %cst_26 = arith.constant 5.000000e-01 : f32
    %71 = vector.broadcast %cst_26 : f32 to vector<8x32xf32>
    %72 = arith.cmpf ogt, %70, %71 : vector<8x32xf32>
    %73 = arith.select %72, %68, %44 : vector<8x32xi1>, vector<8x32xf32>
    %74 = arith.select %72, %66, %45 : vector<8x32xi1>, vector<8x32xf32>
    %c1_27 = arith.constant 1 : index
    %c0_28 = arith.constant 0 : index
    %c0_29 = arith.constant 0 : index
    %75 = vector.load %arg10[%c1_27, %c0_28, %c0_29] : memref<8x8x32xf32, #tpu.memory_space<vmem>>, vector<1x8x32xf32>
    %76 = vector.shape_cast %75 : vector<1x8x32xf32> to vector<8x32xf32>
    %77 = vector.shape_cast %73 : vector<8x32xf32> to vector<1x8x32xf32>
    tpu.vector_store %arg10[%c1_27, %c0_28, %c0_29], %77 {strides = array<i32>} : memref<8x8x32xf32, #tpu.memory_space<vmem>>, vector<1x8x32xf32>,
    %78 = vector.extract_strided_slice %17 {offsets = [2, 0, 0], sizes = [1, 8, 128], strides = [1, 1, 1]} : vector<8x8x128xf32> to vector<1x8x128xf32>
    %79 = vector.shape_cast %78 : vector<1x8x128xf32> to vector<8x128xf32>
    %cst_30 = arith.constant dense<0.000000e+00> : vector<8x128xf32>
    %80 = tpu.matmul %73, %9, %cst_30 {dimension_numbers = #tpu.dot_dimension_numbers<[1], [0], [0], [1], [0, 0, 1, 1], [], []>} : vector<8x32xf32>, vector<32x128xf32>, vector<8x128xf32> -> vector<8x128xf32>
    %81 = arith.addf %79, %80 : vector<8x128xf32>
    %82 = math.tanh %81 : vector<8x128xf32>
    %83 = arith.negf %81 : vector<8x128xf32>
    %84 = math.exp %83 : vector<8x128xf32>
    %cst_31 = arith.constant 1.000000e+00 : f32
    %85 = vector.broadcast %cst_31 : f32 to vector<8x128xf32>
    %86 = arith.addf %85, %84 : vector<8x128xf32>
    %87 = arith.divf %85, %86 : vector<8x128xf32>
    %88 = arith.select %5, %82, %87 : vector<8x128xi1>, vector<8x128xf32>
    %89 = vector.extract_strided_slice %88 {offsets = [0, 0], sizes = [8, 32], strides = [1, 1]} : vector<8x128xf32> to vector<8x32xf32>
    %90 = vector.extract_strided_slice %88 {offsets = [0, 32], sizes = [8, 32], strides = [1, 1]} : vector<8x128xf32> to vector<8x32xf32>
    %91 = vector.extract_strided_slice %88 {offsets = [0, 64], sizes = [8, 32], strides = [1, 1]} : vector<8x128xf32> to vector<8x32xf32>
    %92 = vector.extract_strided_slice %88 {offsets = [0, 96], sizes = [8, 32], strides = [1, 1]} : vector<8x128xf32> to vector<8x32xf32>
    %93 = arith.mulf %90, %74 : vector<8x32xf32>
    %94 = arith.mulf %89, %91 : vector<8x32xf32>
    %95 = arith.addf %93, %94 : vector<8x32xf32>
    %96 = math.tanh %95 : vector<8x32xf32>
    %97 = arith.mulf %92, %96 : vector<8x32xf32>
    %c2 = arith.constant 2 : index
    %c0_32 = arith.constant 0 : index
    %c0_33 = arith.constant 0 : index
    %98 = vector.load %arg1[%c2, %c0_32, %c0_33] : memref<8x8x32xf32, #tpu.memory_space<vmem>>, vector<1x8x32xf32>
    %99 = vector.shape_cast %98 : vector<1x8x32xf32> to vector<8x32xf32>
    %cst_34 = arith.constant 5.000000e-01 : f32
    %100 = vector.broadcast %cst_34 : f32 to vector<8x32xf32>
    %101 = arith.cmpf ogt, %99, %100 : vector<8x32xf32>
    %102 = arith.select %101, %97, %73 : vector<8x32xi1>, vector<8x32xf32>
    %103 = arith.select %101, %95, %74 : vector<8x32xi1>, vector<8x32xf32>
    %c2_35 = arith.constant 2 : index
    %c0_36 = arith.constant 0 : index
    %c0_37 = arith.constant 0 : index
    %104 = vector.load %arg10[%c2_35, %c0_36, %c0_37] : memref<8x8x32xf32, #tpu.memory_space<vmem>>, vector<1x8x32xf32>
    %105 = vector.shape_cast %104 : vector<1x8x32xf32> to vector<8x32xf32>
    %106 = vector.shape_cast %102 : vector<8x32xf32> to vector<1x8x32xf32>
    tpu.vector_store %arg10[%c2_35, %c0_36, %c0_37], %106 {strides = array<i32>} : memref<8x8x32xf32, #tpu.memory_space<vmem>>, vector<1x8x32xf32>,
    %107 = vector.extract_strided_slice %17 {offsets = [3, 0, 0], sizes = [1, 8, 128], strides = [1, 1, 1]} : vector<8x8x128xf32> to vector<1x8x128xf32>
    %108 = vector.shape_cast %107 : vector<1x8x128xf32> to vector<8x128xf32>
    %cst_38 = arith.constant dense<0.000000e+00> : vector<8x128xf32>
    %109 = tpu.matmul %102, %9, %cst_38 {dimension_numbers = #tpu.dot_dimension_numbers<[1], [0], [0], [1], [0, 0, 1, 1], [], []>} : vector<8x32xf32>, vector<32x128xf32>, vector<8x128xf32> -> vector<8x128xf32>
    %110 = arith.addf %108, %109 : vector<8x128xf32>
    %111 = math.tanh %110 : vector<8x128xf32>
    %112 = arith.negf %110 : vector<8x128xf32>
    %113 = math.exp %112 : vector<8x128xf32>
    %cst_39 = arith.constant 1.000000e+00 : f32
    %114 = vector.broadcast %cst_39 : f32 to vector<8x128xf32>
    %115 = arith.addf %114, %113 : vector<8x128xf32>
    %116 = arith.divf %114, %115 : vector<8x128xf32>
    %117 = arith.select %5, %111, %116 : vector<8x128xi1>, vector<8x128xf32>
    %118 = vector.extract_strided_slice %117 {offsets = [0, 0], sizes = [8, 32], strides = [1, 1]} : vector<8x128xf32> to vector<8x32xf32>
    %119 = vector.extract_strided_slice %117 {offsets = [0, 32], sizes = [8, 32], strides = [1, 1]} : vector<8x128xf32> to vector<8x32xf32>
    %120 = vector.extract_strided_slice %117 {offsets = [0, 64], sizes = [8, 32], strides = [1, 1]} : vector<8x128xf32> to vector<8x32xf32>
    %121 = vector.extract_strided_slice %117 {offsets = [0, 96], sizes = [8, 32], strides = [1, 1]} : vector<8x128xf32> to vector<8x32xf32>
    %122 = arith.mulf %119, %103 : vector<8x32xf32>
    %123 = arith.mulf %118, %120 : vector<8x32xf32>
    %124 = arith.addf %122, %123 : vector<8x32xf32>
    %125 = math.tanh %124 : vector<8x32xf32>
    %126 = arith.mulf %121, %125 : vector<8x32xf32>
    %c3 = arith.constant 3 : index
    %c0_40 = arith.constant 0 : index
    %c0_41 = arith.constant 0 : index
    %127 = vector.load %arg1[%c3, %c0_40, %c0_41] : memref<8x8x32xf32, #tpu.memory_space<vmem>>, vector<1x8x32xf32>
    %128 = vector.shape_cast %127 : vector<1x8x32xf32> to vector<8x32xf32>
    %cst_42 = arith.constant 5.000000e-01 : f32
    %129 = vector.broadcast %cst_42 : f32 to vector<8x32xf32>
    %130 = arith.cmpf ogt, %128, %129 : vector<8x32xf32>
    %131 = arith.select %130, %126, %102 : vector<8x32xi1>, vector<8x32xf32>
    %132 = arith.select %130, %124, %103 : vector<8x32xi1>, vector<8x32xf32>
    %c3_43 = arith.constant 3 : index
    %c0_44 = arith.constant 0 : index
    %c0_45 = arith.constant 0 : index
    %133 = vector.load %arg10[%c3_43, %c0_44, %c0_45] : memref<8x8x32xf32, #tpu.memory_space<vmem>>, vector<1x8x32xf32>
    %134 = vector.shape_cast %133 : vector<1x8x32xf32> to vector<8x32xf32>
    %135 = vector.shape_cast %131 : vector<8x32xf32> to vector<1x8x32xf32>
    tpu.vector_store %arg10[%c3_43, %c0_44, %c0_45], %135 {strides = array<i32>} : memref<8x8x32xf32, #tpu.memory_space<vmem>>, vector<1x8x32xf32>,
    %136 = vector.extract_strided_slice %17 {offsets = [4, 0, 0], sizes = [1, 8, 128], strides = [1, 1, 1]} : vector<8x8x128xf32> to vector<1x8x128xf32>
    %137 = vector.shape_cast %136 : vector<1x8x128xf32> to vector<8x128xf32>
    %cst_46 = arith.constant dense<0.000000e+00> : vector<8x128xf32>
    %138 = tpu.matmul %131, %9, %cst_46 {dimension_numbers = #tpu.dot_dimension_numbers<[1], [0], [0], [1], [0, 0, 1, 1], [], []>} : vector<8x32xf32>, vector<32x128xf32>, vector<8x128xf32> -> vector<8x128xf32>
    %139 = arith.addf %137, %138 : vector<8x128xf32>
    %140 = math.tanh %139 : vector<8x128xf32>
    %141 = arith.negf %139 : vector<8x128xf32>
    %142 = math.exp %141 : vector<8x128xf32>
    %cst_47 = arith.constant 1.000000e+00 : f32
    %143 = vector.broadcast %cst_47 : f32 to vector<8x128xf32>
    %144 = arith.addf %143, %142 : vector<8x128xf32>
    %145 = arith.divf %143, %144 : vector<8x128xf32>
    %146 = arith.select %5, %140, %145 : vector<8x128xi1>, vector<8x128xf32>
    %147 = vector.extract_strided_slice %146 {offsets = [0, 0], sizes = [8, 32], strides = [1, 1]} : vector<8x128xf32> to vector<8x32xf32>
    %148 = vector.extract_strided_slice %146 {offsets = [0, 32], sizes = [8, 32], strides = [1, 1]} : vector<8x128xf32> to vector<8x32xf32>
    %149 = vector.extract_strided_slice %146 {offsets = [0, 64], sizes = [8, 32], strides = [1, 1]} : vector<8x128xf32> to vector<8x32xf32>
    %150 = vector.extract_strided_slice %146 {offsets = [0, 96], sizes = [8, 32], strides = [1, 1]} : vector<8x128xf32> to vector<8x32xf32>
    %151 = arith.mulf %148, %132 : vector<8x32xf32>
    %152 = arith.mulf %147, %149 : vector<8x32xf32>
    %153 = arith.addf %151, %152 : vector<8x32xf32>
    %154 = math.tanh %153 : vector<8x32xf32>
    %155 = arith.mulf %150, %154 : vector<8x32xf32>
    %c4 = arith.constant 4 : index
    %c0_48 = arith.constant 0 : index
    %c0_49 = arith.constant 0 : index
    %156 = vector.load %arg1[%c4, %c0_48, %c0_49] : memref<8x8x32xf32, #tpu.memory_space<vmem>>, vector<1x8x32xf32>
    %157 = vector.shape_cast %156 : vector<1x8x32xf32> to vector<8x32xf32>
    %cst_50 = arith.constant 5.000000e-01 : f32
    %158 = vector.broadcast %cst_50 : f32 to vector<8x32xf32>
    %159 = arith.cmpf ogt, %157, %158 : vector<8x32xf32>
    %160 = arith.select %159, %155, %131 : vector<8x32xi1>, vector<8x32xf32>
    %161 = arith.select %159, %153, %132 : vector<8x32xi1>, vector<8x32xf32>
    %c4_51 = arith.constant 4 : index
    %c0_52 = arith.constant 0 : index
    %c0_53 = arith.constant 0 : index
    %162 = vector.load %arg10[%c4_51, %c0_52, %c0_53] : memref<8x8x32xf32, #tpu.memory_space<vmem>>, vector<1x8x32xf32>
    %163 = vector.shape_cast %162 : vector<1x8x32xf32> to vector<8x32xf32>
    %164 = vector.shape_cast %160 : vector<8x32xf32> to vector<1x8x32xf32>
    tpu.vector_store %arg10[%c4_51, %c0_52, %c0_53], %164 {strides = array<i32>} : memref<8x8x32xf32, #tpu.memory_space<vmem>>, vector<1x8x32xf32>,
    %165 = vector.extract_strided_slice %17 {offsets = [5, 0, 0], sizes = [1, 8, 128], strides = [1, 1, 1]} : vector<8x8x128xf32> to vector<1x8x128xf32>
    %166 = vector.shape_cast %165 : vector<1x8x128xf32> to vector<8x128xf32>
    %cst_54 = arith.constant dense<0.000000e+00> : vector<8x128xf32>
    %167 = tpu.matmul %160, %9, %cst_54 {dimension_numbers = #tpu.dot_dimension_numbers<[1], [0], [0], [1], [0, 0, 1, 1], [], []>} : vector<8x32xf32>, vector<32x128xf32>, vector<8x128xf32> -> vector<8x128xf32>
    %168 = arith.addf %166, %167 : vector<8x128xf32>
    %169 = math.tanh %168 : vector<8x128xf32>
    %170 = arith.negf %168 : vector<8x128xf32>
    %171 = math.exp %170 : vector<8x128xf32>
    %cst_55 = arith.constant 1.000000e+00 : f32
    %172 = vector.broadcast %cst_55 : f32 to vector<8x128xf32>
    %173 = arith.addf %172, %171 : vector<8x128xf32>
    %174 = arith.divf %172, %173 : vector<8x128xf32>
    %175 = arith.select %5, %169, %174 : vector<8x128xi1>, vector<8x128xf32>
    %176 = vector.extract_strided_slice %175 {offsets = [0, 0], sizes = [8, 32], strides = [1, 1]} : vector<8x128xf32> to vector<8x32xf32>
    %177 = vector.extract_strided_slice %175 {offsets = [0, 32], sizes = [8, 32], strides = [1, 1]} : vector<8x128xf32> to vector<8x32xf32>
    %178 = vector.extract_strided_slice %175 {offsets = [0, 64], sizes = [8, 32], strides = [1, 1]} : vector<8x128xf32> to vector<8x32xf32>
    %179 = vector.extract_strided_slice %175 {offsets = [0, 96], sizes = [8, 32], strides = [1, 1]} : vector<8x128xf32> to vector<8x32xf32>
    %180 = arith.mulf %177, %161 : vector<8x32xf32>
    %181 = arith.mulf %176, %178 : vector<8x32xf32>
    %182 = arith.addf %180, %181 : vector<8x32xf32>
    %183 = math.tanh %182 : vector<8x32xf32>
    %184 = arith.mulf %179, %183 : vector<8x32xf32>
    %c5 = arith.constant 5 : index
    %c0_56 = arith.constant 0 : index
    %c0_57 = arith.constant 0 : index
    %185 = vector.load %arg1[%c5, %c0_56, %c0_57] : memref<8x8x32xf32, #tpu.memory_space<vmem>>, vector<1x8x32xf32>
    %186 = vector.shape_cast %185 : vector<1x8x32xf32> to vector<8x32xf32>
    %cst_58 = arith.constant 5.000000e-01 : f32
    %187 = vector.broadcast %cst_58 : f32 to vector<8x32xf32>
    %188 = arith.cmpf ogt, %186, %187 : vector<8x32xf32>
    %189 = arith.select %188, %184, %160 : vector<8x32xi1>, vector<8x32xf32>
    %190 = arith.select %188, %182, %161 : vector<8x32xi1>, vector<8x32xf32>
    %c5_59 = arith.constant 5 : index
    %c0_60 = arith.constant 0 : index
    %c0_61 = arith.constant 0 : index
    %191 = vector.load %arg10[%c5_59, %c0_60, %c0_61] : memref<8x8x32xf32, #tpu.memory_space<vmem>>, vector<1x8x32xf32>
    %192 = vector.shape_cast %191 : vector<1x8x32xf32> to vector<8x32xf32>
    %193 = vector.shape_cast %189 : vector<8x32xf32> to vector<1x8x32xf32>
    tpu.vector_store %arg10[%c5_59, %c0_60, %c0_61], %193 {strides = array<i32>} : memref<8x8x32xf32, #tpu.memory_space<vmem>>, vector<1x8x32xf32>,
    %194 = vector.extract_strided_slice %17 {offsets = [6, 0, 0], sizes = [1, 8, 128], strides = [1, 1, 1]} : vector<8x8x128xf32> to vector<1x8x128xf32>
    %195 = vector.shape_cast %194 : vector<1x8x128xf32> to vector<8x128xf32>
    %cst_62 = arith.constant dense<0.000000e+00> : vector<8x128xf32>
    %196 = tpu.matmul %189, %9, %cst_62 {dimension_numbers = #tpu.dot_dimension_numbers<[1], [0], [0], [1], [0, 0, 1, 1], [], []>} : vector<8x32xf32>, vector<32x128xf32>, vector<8x128xf32> -> vector<8x128xf32>
    %197 = arith.addf %195, %196 : vector<8x128xf32>
    %198 = math.tanh %197 : vector<8x128xf32>
    %199 = arith.negf %197 : vector<8x128xf32>
    %200 = math.exp %199 : vector<8x128xf32>
    %cst_63 = arith.constant 1.000000e+00 : f32
    %201 = vector.broadcast %cst_63 : f32 to vector<8x128xf32>
    %202 = arith.addf %201, %200 : vector<8x128xf32>
    %203 = arith.divf %201, %202 : vector<8x128xf32>
    %204 = arith.select %5, %198, %203 : vector<8x128xi1>, vector<8x128xf32>
    %205 = vector.extract_strided_slice %204 {offsets = [0, 0], sizes = [8, 32], strides = [1, 1]} : vector<8x128xf32> to vector<8x32xf32>
    %206 = vector.extract_strided_slice %204 {offsets = [0, 32], sizes = [8, 32], strides = [1, 1]} : vector<8x128xf32> to vector<8x32xf32>
    %207 = vector.extract_strided_slice %204 {offsets = [0, 64], sizes = [8, 32], strides = [1, 1]} : vector<8x128xf32> to vector<8x32xf32>
    %208 = vector.extract_strided_slice %204 {offsets = [0, 96], sizes = [8, 32], strides = [1, 1]} : vector<8x128xf32> to vector<8x32xf32>
    %209 = arith.mulf %206, %190 : vector<8x32xf32>
    %210 = arith.mulf %205, %207 : vector<8x32xf32>
    %211 = arith.addf %209, %210 : vector<8x32xf32>
    %212 = math.tanh %211 : vector<8x32xf32>
    %213 = arith.mulf %208, %212 : vector<8x32xf32>
    %c6 = arith.constant 6 : index
    %c0_64 = arith.constant 0 : index
    %c0_65 = arith.constant 0 : index
    %214 = vector.load %arg1[%c6, %c0_64, %c0_65] : memref<8x8x32xf32, #tpu.memory_space<vmem>>, vector<1x8x32xf32>
    %215 = vector.shape_cast %214 : vector<1x8x32xf32> to vector<8x32xf32>
    %cst_66 = arith.constant 5.000000e-01 : f32
    %216 = vector.broadcast %cst_66 : f32 to vector<8x32xf32>
    %217 = arith.cmpf ogt, %215, %216 : vector<8x32xf32>
    %218 = arith.select %217, %213, %189 : vector<8x32xi1>, vector<8x32xf32>
    %219 = arith.select %217, %211, %190 : vector<8x32xi1>, vector<8x32xf32>
    %c6_67 = arith.constant 6 : index
    %c0_68 = arith.constant 0 : index
    %c0_69 = arith.constant 0 : index
    %220 = vector.load %arg10[%c6_67, %c0_68, %c0_69] : memref<8x8x32xf32, #tpu.memory_space<vmem>>, vector<1x8x32xf32>
    %221 = vector.shape_cast %220 : vector<1x8x32xf32> to vector<8x32xf32>
    %222 = vector.shape_cast %218 : vector<8x32xf32> to vector<1x8x32xf32>
    tpu.vector_store %arg10[%c6_67, %c0_68, %c0_69], %222 {strides = array<i32>} : memref<8x8x32xf32, #tpu.memory_space<vmem>>, vector<1x8x32xf32>,
    %223 = vector.extract_strided_slice %17 {offsets = [7, 0, 0], sizes = [1, 8, 128], strides = [1, 1, 1]} : vector<8x8x128xf32> to vector<1x8x128xf32>
    %224 = vector.shape_cast %223 : vector<1x8x128xf32> to vector<8x128xf32>
    %cst_70 = arith.constant dense<0.000000e+00> : vector<8x128xf32>
    %225 = tpu.matmul %218, %9, %cst_70 {dimension_numbers = #tpu.dot_dimension_numbers<[1], [0], [0], [1], [0, 0, 1, 1], [], []>} : vector<8x32xf32>, vector<32x128xf32>, vector<8x128xf32> -> vector<8x128xf32>
    %226 = arith.addf %224, %225 : vector<8x128xf32>
    %227 = math.tanh %226 : vector<8x128xf32>
    %228 = arith.negf %226 : vector<8x128xf32>
    %229 = math.exp %228 : vector<8x128xf32>
    %cst_71 = arith.constant 1.000000e+00 : f32
    %230 = vector.broadcast %cst_71 : f32 to vector<8x128xf32>
    %231 = arith.addf %230, %229 : vector<8x128xf32>
    %232 = arith.divf %230, %231 : vector<8x128xf32>
    %233 = arith.select %5, %227, %232 : vector<8x128xi1>, vector<8x128xf32>
    %234 = vector.extract_strided_slice %233 {offsets = [0, 0], sizes = [8, 32], strides = [1, 1]} : vector<8x128xf32> to vector<8x32xf32>
    %235 = vector.extract_strided_slice %233 {offsets = [0, 32], sizes = [8, 32], strides = [1, 1]} : vector<8x128xf32> to vector<8x32xf32>
    %236 = vector.extract_strided_slice %233 {offsets = [0, 64], sizes = [8, 32], strides = [1, 1]} : vector<8x128xf32> to vector<8x32xf32>
    %237 = vector.extract_strided_slice %233 {offsets = [0, 96], sizes = [8, 32], strides = [1, 1]} : vector<8x128xf32> to vector<8x32xf32>
    %238 = arith.mulf %235, %219 : vector<8x32xf32>
    %239 = arith.mulf %234, %236 : vector<8x32xf32>
    %240 = arith.addf %238, %239 : vector<8x32xf32>
    %241 = math.tanh %240 : vector<8x32xf32>
    %242 = arith.mulf %237, %241 : vector<8x32xf32>
    %c7 = arith.constant 7 : index
    %c0_72 = arith.constant 0 : index
    %c0_73 = arith.constant 0 : index
    %243 = vector.load %arg1[%c7, %c0_72, %c0_73] : memref<8x8x32xf32, #tpu.memory_space<vmem>>, vector<1x8x32xf32>
    %244 = vector.shape_cast %243 : vector<1x8x32xf32> to vector<8x32xf32>
    %cst_74 = arith.constant 5.000000e-01 : f32
    %245 = vector.broadcast %cst_74 : f32 to vector<8x32xf32>
    %246 = arith.cmpf ogt, %244, %245 : vector<8x32xf32>
    %247 = arith.select %246, %242, %218 : vector<8x32xi1>, vector<8x32xf32>
    %c7_75 = arith.constant 7 : index
    %c0_76 = arith.constant 0 : index
    %c0_77 = arith.constant 0 : index
    %248 = vector.load %arg10[%c7_75, %c0_76, %c0_77] : memref<8x8x32xf32, #tpu.memory_space<vmem>>, vector<1x8x32xf32>
    %249 = vector.shape_cast %248 : vector<1x8x32xf32> to vector<8x32xf32>
    %250 = vector.shape_cast %247 : vector<8x32xf32> to vector<1x8x32xf32>
    tpu.vector_store %arg10[%c7_75, %c0_76, %c0_77], %250 {strides = array<i32>} : memref<8x8x32xf32, #tpu.memory_space<vmem>>, vector<1x8x32xf32>,
    %c1_78 = arith.constant 1 : index
    %c0_79 = arith.constant 0 : index
    %c0_80 = arith.constant 0 : index
    %251 = vector.load %arg2[%c1_78, %c0_79, %c0_80] : memref<2x32x128xf32, #tpu.memory_space<vmem>>, vector<1x32x128xf32>
    %252 = vector.shape_cast %251 : vector<1x32x128xf32> to vector<32x128xf32>
    %c1_81 = arith.constant 1 : index
    %c0_82 = arith.constant 0 : index
    %c0_83 = arith.constant 0 : index
    %253 = vector.load %arg3[%c1_81, %c0_82, %c0_83] : memref<2x32x128xf32, #tpu.memory_space<vmem>>, vector<1x32x128xf32>
    %254 = vector.shape_cast %253 : vector<1x32x128xf32> to vector<32x128xf32>
    %c0_84 = arith.constant 0 : index
    %c0_85 = arith.constant 0 : index
    %c0_86 = arith.constant 0 : index
    %255 = vector.load %arg10[%c0_84, %c0_85, %c0_86] : memref<8x8x32xf32, #tpu.memory_space<vmem>>, vector<8x8x32xf32>
    %256 = vector.shape_cast %255 : vector<8x8x32xf32> to vector<64x32xf32>
    %cst_87 = arith.constant dense<0.000000e+00> : vector<64x128xf32>
    %257 = tpu.matmul %256, %252, %cst_87 {dimension_numbers = #tpu.dot_dimension_numbers<[1], [0], [0], [1], [0, 0, 1, 1], [], []>} : vector<64x32xf32>, vector<32x128xf32>, vector<64x128xf32> -> vector<64x128xf32>
    %c1_88 = arith.constant 1 : index
    %c0_89 = arith.constant 0 : index
    %c0_90 = arith.constant 0 : index
    %258 = vector.load %arg4[%c1_88, %c0_89, %c0_90] : memref<2x1x128xf32, #tpu.memory_space<vmem>>, vector<1x1x128xf32>
    %259 = vector.shape_cast %258 : vector<1x1x128xf32> to vector<1x128xf32>
    %260 = vector.broadcast %259 : vector<1x128xf32> to vector<64x128xf32>
    %261 = arith.addf %257, %260 : vector<64x128xf32>
    %262 = vector.shape_cast %261 : vector<64x128xf32> to vector<8x8x128xf32>
    %cst_91 = arith.constant 0.000000e+00 : f32
    %263 = vector.broadcast %cst_91 : f32 to vector<8x32xf32>
    %cst_92 = arith.constant 0.000000e+00 : f32
    %264 = vector.broadcast %cst_92 : f32 to vector<8x32xf32>
    %265 = vector.extract_strided_slice %262 {offsets = [0, 0, 0], sizes = [1, 8, 128], strides = [1, 1, 1]} : vector<8x8x128xf32> to vector<1x8x128xf32>
    %266 = vector.shape_cast %265 : vector<1x8x128xf32> to vector<8x128xf32>
    %cst_93 = arith.constant dense<0.000000e+00> : vector<8x128xf32>
    %267 = tpu.matmul %263, %254, %cst_93 {dimension_numbers = #tpu.dot_dimension_numbers<[1], [0], [0], [1], [0, 0, 1, 1], [], []>} : vector<8x32xf32>, vector<32x128xf32>, vector<8x128xf32> -> vector<8x128xf32>
    %268 = arith.addf %266, %267 : vector<8x128xf32>
    %269 = math.tanh %268 : vector<8x128xf32>
    %270 = arith.negf %268 : vector<8x128xf32>
    %271 = math.exp %270 : vector<8x128xf32>
    %cst_94 = arith.constant 1.000000e+00 : f32
    %272 = vector.broadcast %cst_94 : f32 to vector<8x128xf32>
    %273 = arith.addf %272, %271 : vector<8x128xf32>
    %274 = arith.divf %272, %273 : vector<8x128xf32>
    %275 = arith.select %5, %269, %274 : vector<8x128xi1>, vector<8x128xf32>
    %276 = vector.extract_strided_slice %275 {offsets = [0, 0], sizes = [8, 32], strides = [1, 1]} : vector<8x128xf32> to vector<8x32xf32>
    %277 = vector.extract_strided_slice %275 {offsets = [0, 32], sizes = [8, 32], strides = [1, 1]} : vector<8x128xf32> to vector<8x32xf32>
    %278 = vector.extract_strided_slice %275 {offsets = [0, 64], sizes = [8, 32], strides = [1, 1]} : vector<8x128xf32> to vector<8x32xf32>
    %279 = vector.extract_strided_slice %275 {offsets = [0, 96], sizes = [8, 32], strides = [1, 1]} : vector<8x128xf32> to vector<8x32xf32>
    %280 = arith.mulf %277, %264 : vector<8x32xf32>
    %281 = arith.mulf %276, %278 : vector<8x32xf32>
    %282 = arith.addf %280, %281 : vector<8x32xf32>
    %283 = math.tanh %282 : vector<8x32xf32>
    %284 = arith.mulf %279, %283 : vector<8x32xf32>
    %c0_95 = arith.constant 0 : index
    %c0_96 = arith.constant 0 : index
    %c0_97 = arith.constant 0 : index
    %285 = vector.load %arg1[%c0_95, %c0_96, %c0_97] : memref<8x8x32xf32, #tpu.memory_space<vmem>>, vector<1x8x32xf32>
    %286 = vector.shape_cast %285 : vector<1x8x32xf32> to vector<8x32xf32>
    %cst_98 = arith.constant 5.000000e-01 : f32
    %287 = vector.broadcast %cst_98 : f32 to vector<8x32xf32>
    %288 = arith.cmpf ogt, %286, %287 : vector<8x32xf32>
    %289 = arith.select %288, %284, %263 : vector<8x32xi1>, vector<8x32xf32>
    %290 = arith.select %288, %282, %264 : vector<8x32xi1>, vector<8x32xf32>
    %291 = vector.extract_strided_slice %262 {offsets = [1, 0, 0], sizes = [1, 8, 128], strides = [1, 1, 1]} : vector<8x8x128xf32> to vector<1x8x128xf32>
    %292 = vector.shape_cast %291 : vector<1x8x128xf32> to vector<8x128xf32>
    %cst_99 = arith.constant dense<0.000000e+00> : vector<8x128xf32>
    %293 = tpu.matmul %289, %254, %cst_99 {dimension_numbers = #tpu.dot_dimension_numbers<[1], [0], [0], [1], [0, 0, 1, 1], [], []>} : vector<8x32xf32>, vector<32x128xf32>, vector<8x128xf32> -> vector<8x128xf32>
    %294 = arith.addf %292, %293 : vector<8x128xf32>
    %295 = math.tanh %294 : vector<8x128xf32>
    %296 = arith.negf %294 : vector<8x128xf32>
    %297 = math.exp %296 : vector<8x128xf32>
    %cst_100 = arith.constant 1.000000e+00 : f32
    %298 = vector.broadcast %cst_100 : f32 to vector<8x128xf32>
    %299 = arith.addf %298, %297 : vector<8x128xf32>
    %300 = arith.divf %298, %299 : vector<8x128xf32>
    %301 = arith.select %5, %295, %300 : vector<8x128xi1>, vector<8x128xf32>
    %302 = vector.extract_strided_slice %301 {offsets = [0, 0], sizes = [8, 32], strides = [1, 1]} : vector<8x128xf32> to vector<8x32xf32>
    %303 = vector.extract_strided_slice %301 {offsets = [0, 32], sizes = [8, 32], strides = [1, 1]} : vector<8x128xf32> to vector<8x32xf32>
    %304 = vector.extract_strided_slice %301 {offsets = [0, 64], sizes = [8, 32], strides = [1, 1]} : vector<8x128xf32> to vector<8x32xf32>
    %305 = vector.extract_strided_slice %301 {offsets = [0, 96], sizes = [8, 32], strides = [1, 1]} : vector<8x128xf32> to vector<8x32xf32>
    %306 = arith.mulf %303, %290 : vector<8x32xf32>
    %307 = arith.mulf %302, %304 : vector<8x32xf32>
    %308 = arith.addf %306, %307 : vector<8x32xf32>
    %309 = math.tanh %308 : vector<8x32xf32>
    %310 = arith.mulf %305, %309 : vector<8x32xf32>
    %c1_101 = arith.constant 1 : index
    %c0_102 = arith.constant 0 : index
    %c0_103 = arith.constant 0 : index
    %311 = vector.load %arg1[%c1_101, %c0_102, %c0_103] : memref<8x8x32xf32, #tpu.memory_space<vmem>>, vector<1x8x32xf32>
    %312 = vector.shape_cast %311 : vector<1x8x32xf32> to vector<8x32xf32>
    %cst_104 = arith.constant 5.000000e-01 : f32
    %313 = vector.broadcast %cst_104 : f32 to vector<8x32xf32>
    %314 = arith.cmpf ogt, %312, %313 : vector<8x32xf32>
    %315 = arith.select %314, %310, %289 : vector<8x32xi1>, vector<8x32xf32>
    %316 = arith.select %314, %308, %290 : vector<8x32xi1>, vector<8x32xf32>
    %317 = vector.extract_strided_slice %262 {offsets = [2, 0, 0], sizes = [1, 8, 128], strides = [1, 1, 1]} : vector<8x8x128xf32> to vector<1x8x128xf32>
    %318 = vector.shape_cast %317 : vector<1x8x128xf32> to vector<8x128xf32>
    %cst_105 = arith.constant dense<0.000000e+00> : vector<8x128xf32>
    %319 = tpu.matmul %315, %254, %cst_105 {dimension_numbers = #tpu.dot_dimension_numbers<[1], [0], [0], [1], [0, 0, 1, 1], [], []>} : vector<8x32xf32>, vector<32x128xf32>, vector<8x128xf32> -> vector<8x128xf32>
    %320 = arith.addf %318, %319 : vector<8x128xf32>
    %321 = math.tanh %320 : vector<8x128xf32>
    %322 = arith.negf %320 : vector<8x128xf32>
    %323 = math.exp %322 : vector<8x128xf32>
    %cst_106 = arith.constant 1.000000e+00 : f32
    %324 = vector.broadcast %cst_106 : f32 to vector<8x128xf32>
    %325 = arith.addf %324, %323 : vector<8x128xf32>
    %326 = arith.divf %324, %325 : vector<8x128xf32>
    %327 = arith.select %5, %321, %326 : vector<8x128xi1>, vector<8x128xf32>
    %328 = vector.extract_strided_slice %327 {offsets = [0, 0], sizes = [8, 32], strides = [1, 1]} : vector<8x128xf32> to vector<8x32xf32>
    %329 = vector.extract_strided_slice %327 {offsets = [0, 32], sizes = [8, 32], strides = [1, 1]} : vector<8x128xf32> to vector<8x32xf32>
    %330 = vector.extract_strided_slice %327 {offsets = [0, 64], sizes = [8, 32], strides = [1, 1]} : vector<8x128xf32> to vector<8x32xf32>
    %331 = vector.extract_strided_slice %327 {offsets = [0, 96], sizes = [8, 32], strides = [1, 1]} : vector<8x128xf32> to vector<8x32xf32>
    %332 = arith.mulf %329, %316 : vector<8x32xf32>
    %333 = arith.mulf %328, %330 : vector<8x32xf32>
    %334 = arith.addf %332, %333 : vector<8x32xf32>
    %335 = math.tanh %334 : vector<8x32xf32>
    %336 = arith.mulf %331, %335 : vector<8x32xf32>
    %c2_107 = arith.constant 2 : index
    %c0_108 = arith.constant 0 : index
    %c0_109 = arith.constant 0 : index
    %337 = vector.load %arg1[%c2_107, %c0_108, %c0_109] : memref<8x8x32xf32, #tpu.memory_space<vmem>>, vector<1x8x32xf32>
    %338 = vector.shape_cast %337 : vector<1x8x32xf32> to vector<8x32xf32>
    %cst_110 = arith.constant 5.000000e-01 : f32
    %339 = vector.broadcast %cst_110 : f32 to vector<8x32xf32>
    %340 = arith.cmpf ogt, %338, %339 : vector<8x32xf32>
    %341 = arith.select %340, %336, %315 : vector<8x32xi1>, vector<8x32xf32>
    %342 = arith.select %340, %334, %316 : vector<8x32xi1>, vector<8x32xf32>
    %343 = vector.extract_strided_slice %262 {offsets = [3, 0, 0], sizes = [1, 8, 128], strides = [1, 1, 1]} : vector<8x8x128xf32> to vector<1x8x128xf32>
    %344 = vector.shape_cast %343 : vector<1x8x128xf32> to vector<8x128xf32>
    %cst_111 = arith.constant dense<0.000000e+00> : vector<8x128xf32>
    %345 = tpu.matmul %341, %254, %cst_111 {dimension_numbers = #tpu.dot_dimension_numbers<[1], [0], [0], [1], [0, 0, 1, 1], [], []>} : vector<8x32xf32>, vector<32x128xf32>, vector<8x128xf32> -> vector<8x128xf32>
    %346 = arith.addf %344, %345 : vector<8x128xf32>
    %347 = math.tanh %346 : vector<8x128xf32>
    %348 = arith.negf %346 : vector<8x128xf32>
    %349 = math.exp %348 : vector<8x128xf32>
    %cst_112 = arith.constant 1.000000e+00 : f32
    %350 = vector.broadcast %cst_112 : f32 to vector<8x128xf32>
    %351 = arith.addf %350, %349 : vector<8x128xf32>
    %352 = arith.divf %350, %351 : vector<8x128xf32>
    %353 = arith.select %5, %347, %352 : vector<8x128xi1>, vector<8x128xf32>
    %354 = vector.extract_strided_slice %353 {offsets = [0, 0], sizes = [8, 32], strides = [1, 1]} : vector<8x128xf32> to vector<8x32xf32>
    %355 = vector.extract_strided_slice %353 {offsets = [0, 32], sizes = [8, 32], strides = [1, 1]} : vector<8x128xf32> to vector<8x32xf32>
    %356 = vector.extract_strided_slice %353 {offsets = [0, 64], sizes = [8, 32], strides = [1, 1]} : vector<8x128xf32> to vector<8x32xf32>
    %357 = vector.extract_strided_slice %353 {offsets = [0, 96], sizes = [8, 32], strides = [1, 1]} : vector<8x128xf32> to vector<8x32xf32>
    %358 = arith.mulf %355, %342 : vector<8x32xf32>
    %359 = arith.mulf %354, %356 : vector<8x32xf32>
    %360 = arith.addf %358, %359 : vector<8x32xf32>
    %361 = math.tanh %360 : vector<8x32xf32>
    %362 = arith.mulf %357, %361 : vector<8x32xf32>
    %c3_113 = arith.constant 3 : index
    %c0_114 = arith.constant 0 : index
    %c0_115 = arith.constant 0 : index
    %363 = vector.load %arg1[%c3_113, %c0_114, %c0_115] : memref<8x8x32xf32, #tpu.memory_space<vmem>>, vector<1x8x32xf32>
    %364 = vector.shape_cast %363 : vector<1x8x32xf32> to vector<8x32xf32>
    %cst_116 = arith.constant 5.000000e-01 : f32
    %365 = vector.broadcast %cst_116 : f32 to vector<8x32xf32>
    %366 = arith.cmpf ogt, %364, %365 : vector<8x32xf32>
    %367 = arith.select %366, %362, %341 : vector<8x32xi1>, vector<8x32xf32>
    %368 = arith.select %366, %360, %342 : vector<8x32xi1>, vector<8x32xf32>
    %369 = vector.extract_strided_slice %262 {offsets = [4, 0, 0], sizes = [1, 8, 128], strides = [1, 1, 1]} : vector<8x8x128xf32> to vector<1x8x128xf32>
    %370 = vector.shape_cast %369 : vector<1x8x128xf32> to vector<8x128xf32>
    %cst_117 = arith.constant dense<0.000000e+00> : vector<8x128xf32>
    %371 = tpu.matmul %367, %254, %cst_117 {dimension_numbers = #tpu.dot_dimension_numbers<[1], [0], [0], [1], [0, 0, 1, 1], [], []>} : vector<8x32xf32>, vector<32x128xf32>, vector<8x128xf32> -> vector<8x128xf32>
    %372 = arith.addf %370, %371 : vector<8x128xf32>
    %373 = math.tanh %372 : vector<8x128xf32>
    %374 = arith.negf %372 : vector<8x128xf32>
    %375 = math.exp %374 : vector<8x128xf32>
    %cst_118 = arith.constant 1.000000e+00 : f32
    %376 = vector.broadcast %cst_118 : f32 to vector<8x128xf32>
    %377 = arith.addf %376, %375 : vector<8x128xf32>
    %378 = arith.divf %376, %377 : vector<8x128xf32>
    %379 = arith.select %5, %373, %378 : vector<8x128xi1>, vector<8x128xf32>
    %380 = vector.extract_strided_slice %379 {offsets = [0, 0], sizes = [8, 32], strides = [1, 1]} : vector<8x128xf32> to vector<8x32xf32>
    %381 = vector.extract_strided_slice %379 {offsets = [0, 32], sizes = [8, 32], strides = [1, 1]} : vector<8x128xf32> to vector<8x32xf32>
    %382 = vector.extract_strided_slice %379 {offsets = [0, 64], sizes = [8, 32], strides = [1, 1]} : vector<8x128xf32> to vector<8x32xf32>
    %383 = vector.extract_strided_slice %379 {offsets = [0, 96], sizes = [8, 32], strides = [1, 1]} : vector<8x128xf32> to vector<8x32xf32>
    %384 = arith.mulf %381, %368 : vector<8x32xf32>
    %385 = arith.mulf %380, %382 : vector<8x32xf32>
    %386 = arith.addf %384, %385 : vector<8x32xf32>
    %387 = math.tanh %386 : vector<8x32xf32>
    %388 = arith.mulf %383, %387 : vector<8x32xf32>
    %c4_119 = arith.constant 4 : index
    %c0_120 = arith.constant 0 : index
    %c0_121 = arith.constant 0 : index
    %389 = vector.load %arg1[%c4_119, %c0_120, %c0_121] : memref<8x8x32xf32, #tpu.memory_space<vmem>>, vector<1x8x32xf32>
    %390 = vector.shape_cast %389 : vector<1x8x32xf32> to vector<8x32xf32>
    %cst_122 = arith.constant 5.000000e-01 : f32
    %391 = vector.broadcast %cst_122 : f32 to vector<8x32xf32>
    %392 = arith.cmpf ogt, %390, %391 : vector<8x32xf32>
    %393 = arith.select %392, %388, %367 : vector<8x32xi1>, vector<8x32xf32>
    %394 = arith.select %392, %386, %368 : vector<8x32xi1>, vector<8x32xf32>
    %395 = vector.extract_strided_slice %262 {offsets = [5, 0, 0], sizes = [1, 8, 128], strides = [1, 1, 1]} : vector<8x8x128xf32> to vector<1x8x128xf32>
    %396 = vector.shape_cast %395 : vector<1x8x128xf32> to vector<8x128xf32>
    %cst_123 = arith.constant dense<0.000000e+00> : vector<8x128xf32>
    %397 = tpu.matmul %393, %254, %cst_123 {dimension_numbers = #tpu.dot_dimension_numbers<[1], [0], [0], [1], [0, 0, 1, 1], [], []>} : vector<8x32xf32>, vector<32x128xf32>, vector<8x128xf32> -> vector<8x128xf32>
    %398 = arith.addf %396, %397 : vector<8x128xf32>
    %399 = math.tanh %398 : vector<8x128xf32>
    %400 = arith.negf %398 : vector<8x128xf32>
    %401 = math.exp %400 : vector<8x128xf32>
    %cst_124 = arith.constant 1.000000e+00 : f32
    %402 = vector.broadcast %cst_124 : f32 to vector<8x128xf32>
    %403 = arith.addf %402, %401 : vector<8x128xf32>
    %404 = arith.divf %402, %403 : vector<8x128xf32>
    %405 = arith.select %5, %399, %404 : vector<8x128xi1>, vector<8x128xf32>
    %406 = vector.extract_strided_slice %405 {offsets = [0, 0], sizes = [8, 32], strides = [1, 1]} : vector<8x128xf32> to vector<8x32xf32>
    %407 = vector.extract_strided_slice %405 {offsets = [0, 32], sizes = [8, 32], strides = [1, 1]} : vector<8x128xf32> to vector<8x32xf32>
    %408 = vector.extract_strided_slice %405 {offsets = [0, 64], sizes = [8, 32], strides = [1, 1]} : vector<8x128xf32> to vector<8x32xf32>
    %409 = vector.extract_strided_slice %405 {offsets = [0, 96], sizes = [8, 32], strides = [1, 1]} : vector<8x128xf32> to vector<8x32xf32>
    %410 = arith.mulf %407, %394 : vector<8x32xf32>
    %411 = arith.mulf %406, %408 : vector<8x32xf32>
    %412 = arith.addf %410, %411 : vector<8x32xf32>
    %413 = math.tanh %412 : vector<8x32xf32>
    %414 = arith.mulf %409, %413 : vector<8x32xf32>
    %c5_125 = arith.constant 5 : index
    %c0_126 = arith.constant 0 : index
    %c0_127 = arith.constant 0 : index
    %415 = vector.load %arg1[%c5_125, %c0_126, %c0_127] : memref<8x8x32xf32, #tpu.memory_space<vmem>>, vector<1x8x32xf32>
    %416 = vector.shape_cast %415 : vector<1x8x32xf32> to vector<8x32xf32>
    %cst_128 = arith.constant 5.000000e-01 : f32
    %417 = vector.broadcast %cst_128 : f32 to vector<8x32xf32>
    %418 = arith.cmpf ogt, %416, %417 : vector<8x32xf32>
    %419 = arith.select %418, %414, %393 : vector<8x32xi1>, vector<8x32xf32>
    %420 = arith.select %418, %412, %394 : vector<8x32xi1>, vector<8x32xf32>
    %421 = vector.extract_strided_slice %262 {offsets = [6, 0, 0], sizes = [1, 8, 128], strides = [1, 1, 1]} : vector<8x8x128xf32> to vector<1x8x128xf32>
    %422 = vector.shape_cast %421 : vector<1x8x128xf32> to vector<8x128xf32>
    %cst_129 = arith.constant dense<0.000000e+00> : vector<8x128xf32>
    %423 = tpu.matmul %419, %254, %cst_129 {dimension_numbers = #tpu.dot_dimension_numbers<[1], [0], [0], [1], [0, 0, 1, 1], [], []>} : vector<8x32xf32>, vector<32x128xf32>, vector<8x128xf32> -> vector<8x128xf32>
    %424 = arith.addf %422, %423 : vector<8x128xf32>
    %425 = math.tanh %424 : vector<8x128xf32>
    %426 = arith.negf %424 : vector<8x128xf32>
    %427 = math.exp %426 : vector<8x128xf32>
    %cst_130 = arith.constant 1.000000e+00 : f32
    %428 = vector.broadcast %cst_130 : f32 to vector<8x128xf32>
    %429 = arith.addf %428, %427 : vector<8x128xf32>
    %430 = arith.divf %428, %429 : vector<8x128xf32>
    %431 = arith.select %5, %425, %430 : vector<8x128xi1>, vector<8x128xf32>
    %432 = vector.extract_strided_slice %431 {offsets = [0, 0], sizes = [8, 32], strides = [1, 1]} : vector<8x128xf32> to vector<8x32xf32>
    %433 = vector.extract_strided_slice %431 {offsets = [0, 32], sizes = [8, 32], strides = [1, 1]} : vector<8x128xf32> to vector<8x32xf32>
    %434 = vector.extract_strided_slice %431 {offsets = [0, 64], sizes = [8, 32], strides = [1, 1]} : vector<8x128xf32> to vector<8x32xf32>
    %435 = vector.extract_strided_slice %431 {offsets = [0, 96], sizes = [8, 32], strides = [1, 1]} : vector<8x128xf32> to vector<8x32xf32>
    %436 = arith.mulf %433, %420 : vector<8x32xf32>
    %437 = arith.mulf %432, %434 : vector<8x32xf32>
    %438 = arith.addf %436, %437 : vector<8x32xf32>
    %439 = math.tanh %438 : vector<8x32xf32>
    %440 = arith.mulf %435, %439 : vector<8x32xf32>
    %c6_131 = arith.constant 6 : index
    %c0_132 = arith.constant 0 : index
    %c0_133 = arith.constant 0 : index
    %441 = vector.load %arg1[%c6_131, %c0_132, %c0_133] : memref<8x8x32xf32, #tpu.memory_space<vmem>>, vector<1x8x32xf32>
    %442 = vector.shape_cast %441 : vector<1x8x32xf32> to vector<8x32xf32>
    %cst_134 = arith.constant 5.000000e-01 : f32
    %443 = vector.broadcast %cst_134 : f32 to vector<8x32xf32>
    %444 = arith.cmpf ogt, %442, %443 : vector<8x32xf32>
    %445 = arith.select %444, %440, %419 : vector<8x32xi1>, vector<8x32xf32>
    %446 = arith.select %444, %438, %420 : vector<8x32xi1>, vector<8x32xf32>
    %447 = vector.extract_strided_slice %262 {offsets = [7, 0, 0], sizes = [1, 8, 128], strides = [1, 1, 1]} : vector<8x8x128xf32> to vector<1x8x128xf32>
    %448 = vector.shape_cast %447 : vector<1x8x128xf32> to vector<8x128xf32>
    %cst_135 = arith.constant dense<0.000000e+00> : vector<8x128xf32>
    %449 = tpu.matmul %445, %254, %cst_135 {dimension_numbers = #tpu.dot_dimension_numbers<[1], [0], [0], [1], [0, 0, 1, 1], [], []>} : vector<8x32xf32>, vector<32x128xf32>, vector<8x128xf32> -> vector<8x128xf32>
    %450 = arith.addf %448, %449 : vector<8x128xf32>
    %451 = math.tanh %450 : vector<8x128xf32>
    %452 = arith.negf %450 : vector<8x128xf32>
    %453 = math.exp %452 : vector<8x128xf32>
    %cst_136 = arith.constant 1.000000e+00 : f32
    %454 = vector.broadcast %cst_136 : f32 to vector<8x128xf32>
    %455 = arith.addf %454, %453 : vector<8x128xf32>
    %456 = arith.divf %454, %455 : vector<8x128xf32>
    %457 = arith.select %5, %451, %456 : vector<8x128xi1>, vector<8x128xf32>
    %458 = vector.extract_strided_slice %457 {offsets = [0, 0], sizes = [8, 32], strides = [1, 1]} : vector<8x128xf32> to vector<8x32xf32>
    %459 = vector.extract_strided_slice %457 {offsets = [0, 32], sizes = [8, 32], strides = [1, 1]} : vector<8x128xf32> to vector<8x32xf32>
    %460 = vector.extract_strided_slice %457 {offsets = [0, 64], sizes = [8, 32], strides = [1, 1]} : vector<8x128xf32> to vector<8x32xf32>
    %461 = vector.extract_strided_slice %457 {offsets = [0, 96], sizes = [8, 32], strides = [1, 1]} : vector<8x128xf32> to vector<8x32xf32>
    %462 = arith.mulf %459, %446 : vector<8x32xf32>
    %463 = arith.mulf %458, %460 : vector<8x32xf32>
    %464 = arith.addf %462, %463 : vector<8x32xf32>
    %465 = math.tanh %464 : vector<8x32xf32>
    %466 = arith.mulf %461, %465 : vector<8x32xf32>
    %c7_137 = arith.constant 7 : index
    %c0_138 = arith.constant 0 : index
    %c0_139 = arith.constant 0 : index
    %467 = vector.load %arg1[%c7_137, %c0_138, %c0_139] : memref<8x8x32xf32, #tpu.memory_space<vmem>>, vector<1x8x32xf32>
    %468 = vector.shape_cast %467 : vector<1x8x32xf32> to vector<8x32xf32>
    %cst_140 = arith.constant 5.000000e-01 : f32
    %469 = vector.broadcast %cst_140 : f32 to vector<8x32xf32>
    %470 = arith.cmpf ogt, %468, %469 : vector<8x32xf32>
    %471 = arith.select %470, %466, %445 : vector<8x32xi1>, vector<8x32xf32>
    %c0_141 = arith.constant 0 : index
    %c0_142 = arith.constant 0 : index
    %472 = vector.load %arg6[%c0_141, %c0_142] : memref<32x128xf32, #tpu.memory_space<vmem>>, vector<32x128xf32>
    %cst_143 = arith.constant dense<0.000000e+00> : vector<8x128xf32>
    %473 = tpu.matmul %471, %472, %cst_143 {dimension_numbers = #tpu.dot_dimension_numbers<[1], [0], [0], [1], [0, 0, 1, 1], [], []>} : vector<8x32xf32>, vector<32x128xf32>, vector<8x128xf32> -> vector<8x128xf32>
    %c0_144 = arith.constant 0 : index
    %c0_145 = arith.constant 0 : index
    %474 = vector.load %arg5[%c0_144, %c0_145] : memref<8x128xf32, #tpu.memory_space<vmem>>, vector<8x128xf32>
    %c0_146 = arith.constant 0 : index
    %c0_147 = arith.constant 0 : index
    %475 = vector.load %arg7[%c0_146, %c0_147] : memref<128x128xf32, #tpu.memory_space<vmem>>, vector<128x128xf32>
    %cst_148 = arith.constant dense<0.000000e+00> : vector<8x128xf32>
    %476 = tpu.matmul %474, %475, %cst_148 {dimension_numbers = #tpu.dot_dimension_numbers<[1], [0], [0], [1], [0, 0, 1, 1], [], []>} : vector<8x128xf32>, vector<128x128xf32>, vector<8x128xf32> -> vector<8x128xf32>
    %477 = arith.addf %473, %476 : vector<8x128xf32>
    %c0_149 = arith.constant 0 : index
    %c0_150 = arith.constant 0 : index
    %478 = vector.load %arg8[%c0_149, %c0_150] : memref<1x128xf32, #tpu.memory_space<vmem>>, vector<1x128xf32>
    %479 = vector.broadcast %478 : vector<1x128xf32> to vector<8x128xf32>
    %480 = arith.addf %477, %479 : vector<8x128xf32>
    %c0_151 = arith.constant 0 : index
    %c0_152 = arith.constant 0 : index
    %481 = vector.load %arg9[%c0_151, %c0_152] : memref<8x128xf32, #tpu.memory_space<vmem>>, vector<8x128xf32>
    tpu.vector_store %arg9[%c0_151, %c0_152], %480 {strides = array<i32>} : memref<8x128xf32, #tpu.memory_space<vmem>>, vector<8x128xf32>,
    return
  }
}

</mosaic_0001>

<bundles_post_ra>
// kernel: tpu_custom_call.1
= control target key start
LH: loop header
LB: loop body
LE: loop exit
PB: predicated region body
PF: predicated region fallthrough
CT: control target
= control target key end

     0   :  { %14 = vsyncpa [#allocation4], 0  ;;  %s3869_s0 = inlined_call_operand.hbm [shape: f32[8,8,32], index: 0, kind: input, shape index: {}]   ;;  %s3870_s1 = inlined_call_operand.hbm [shape: f32[8,8,32], index: 1, kind: input, shape index: {}]   ;;  %s3871_s2 = inlined_call_operand.hbm [shape: f32[2,32,128], index: 2, kind: input, shape index: {}]   ;;  %s3872_s3 = inlined_call_operand.hbm [shape: f32[2,32,128], index: 3, kind: input, shape index: {}]   ;;  %s3873_s4 = inlined_call_operand.hbm [shape: f32[2,1,128], index: 4, kind: input, shape index: {}]   ;;  %s3874_s5 = inlined_call_operand.vmem [shape: f32[8,128], index: 5, kind: input, shape index: {}]   ;;  %s3875_s6 = inlined_call_operand.hbm [shape: f32[32,128], index: 6, kind: input, shape index: {}]   ;;  %s3876_s7 = inlined_call_operand.hbm [shape: f32[128,128], index: 7, kind: input, shape index: {}]   ;;  %s3877_s8 = inlined_call_operand.vmem [shape: f32[1,128], index: 8, kind: input, shape index: {}]   ;;  %s3878_s9 = inlined_call_operand.hbm [shape: f32[8,128], index: 9, kind: output, shape index: {}]  }
   0x1   :  { %15 = vsyncpa [#allocation7], 0 }
   0x2   :  { %16 = vsyncpa [#allocation10], 0 }
   0x3   :  { %17 = vsyncpa [#allocation13], 0 }
   0x4   :  { %18 = vsyncpa [#allocation5], 0  ;;  %s3226_s30 = smov [#allocation6]   ;;  %s3227_s11 = smov [#allocation9]  }
   0x5   :  { %s36_s10 = sshll.u32 %s3226_s30, 4  ;;  %s60_s12 = sshll.u32 %s3227_s11, 4  ;;  %s37_s10 = int_to_ptr.vmem [resolvable:$true] %s36_s10  ;;  %s61_s12 = int_to_ptr.vmem [resolvable:$true] %s60_s12 }
   0x6   :  { %s3064_s13 = scalar_lea.vmem %s37_s10, 1024  ;;  %p3069_p1 = scmp.lt.s32.totalorder %s37_s10, %s37_s10 }
   0x7   :  { %p3065_p0 = scmp.ne.s32.totalorder %s37_s10, %s3064_s13  ;;  %p3070_p2 = scmp.lt.s32.totalorder %s3064_s13, %s3064_s13 }
   0x9   :  { %p3071_p3 = por %p3070_p2, %p3069_p1 }
   0xb   :  { %p3072_p4 = pnand %p3071_p3, %p3065_p0 }
   0xd   :  { %3075 = shalt.err (!%p3072_p4)
}
   0xe   :  { %s3228_s14 = smov 128   ;;  %s3229_s15 = smov 8  }
   0xf   :  { %42 = dma.hbm_to_vmem [thread:$0]  %s3870_s1, 1024, %s37_s10, [#allocation7], %s3228_s14, %s3228_s14, %s3229_s15  }
  0x10   :  { %s3084_s18 = scalar_lea.vmem %s61_s12, 1024  ;;  %p3089_p6 = scmp.lt.s32.totalorder %s61_s12, %s61_s12 }
  0x11   :  { %p3085_p5 = scmp.ne.s32.totalorder %s61_s12, %s3084_s18  ;;  %p3090_p7 = scmp.lt.s32.totalorder %s3084_s18, %s3084_s18 }
  0x13   :  { %p3091_p8 = por %p3090_p7, %p3089_p6 }
  0x15   :  { %p3092_p9 = pnand %p3091_p8, %p3085_p5 }
  0x17   :  { %3095 = shalt.err (!%p3092_p9)
}
  0x18   :  { %66 = dma.hbm_to_vmem [thread:$0]  %s3872_s3, 1024, %s61_s12, [#allocation10], %s3228_s14, %s3228_s14, %s3229_s15  }
  0x19   :  { %s3230_s21 = smov [#allocation12]   ;;  %s3231_s23 = smov [#allocation3]  }
  0x1a   :  { %s86_s22 = sshll.u32 %s3230_s21, 4  ;;  %s24_s24 = sshll.u32 %s3231_s23, 4  ;;  %s87_s22 = int_to_ptr.vmem [resolvable:$true] %s86_s22  ;;  %s25_s24 = int_to_ptr.vmem [resolvable:$true] %s24_s24 }
  0x1b   :  { %s3104_s1 = scalar_lea.vmem %s87_s22, 512  ;;  %p3109_p11 = scmp.lt.s32.totalorder %s87_s22, %s87_s22 }
  0x1c   :  { %p3105_p10 = scmp.ne.s32.totalorder %s87_s22, %s3104_s1  ;;  %p3110_p12 = scmp.lt.s32.totalorder %s3104_s1, %s3104_s1 }
  0x1e   :  { %p3111_p13 = por %p3110_p12, %p3109_p11 }
  0x20   :  { %p3112_p0 = pnand %p3111_p13, %p3105_p10 }
  0x22   :  { %3115 = shalt.err (!%p3112_p0)
}
  0x23   :  { %92 = dma.hbm_to_vmem [thread:$0]  %s3875_s6, 512, %s87_s22, [#allocation13], %s3228_s14, %s3228_s14, %s3229_s15  }
  0x24   :  { %s3124_s3 = scalar_lea.vmem %s25_s24, 1024  ;;  %p3129_p2 = scmp.lt.s32.totalorder %s25_s24, %s25_s24 }
  0x25   :  { %p3125_p1 = scmp.ne.s32.totalorder %s25_s24, %s3124_s3  ;;  %p3130_p3 = scmp.lt.s32.totalorder %s3124_s3, %s3124_s3 }
  0x27   :  { %p3131_p4 = por %p3130_p3, %p3129_p2 }
  0x29   :  { %p3132_p5 = pnand %p3131_p4, %p3125_p1 }
  0x2b   :  { %3135 = shalt.err (!%p3132_p5)
}
  0x2c   :  { %30 = dma.hbm_to_vmem [thread:$0]  %s3869_s0, 1024, %s25_s24, [#allocation4], %s3228_s14, %s3228_s14, %s3229_s15  }
  0x2d   :  { %s3232_s29 = smov [#allocation8]   ;;  %s3233_s10 = smov [#allocation11]  }
  0x2e   :  { %s48_s30 = sshll.u32 %s3232_s29, 4  ;;  %s72_s11 = sshll.u32 %s3233_s10, 4  ;;  %s49_s30 = int_to_ptr.vmem [resolvable:$true] %s48_s30  ;;  %s73_s11 = int_to_ptr.vmem [resolvable:$true] %s72_s11 }
  0x2f   :  { %s3144_s6 = scalar_lea.vmem %s49_s30, 1024  ;;  %p3149_p7 = scmp.lt.s32.totalorder %s49_s30, %s49_s30 }
  0x30   :  { %p3145_p6 = scmp.ne.s32.totalorder %s49_s30, %s3144_s6  ;;  %p3150_p8 = scmp.lt.s32.totalorder %s3144_s6, %s3144_s6 }
  0x32   :  { %p3151_p9 = por %p3150_p8, %p3149_p7 }
  0x34   :  { %p3152_p10 = pnand %p3151_p9, %p3145_p6 }
  0x36   :  { %3155 = shalt.err (!%p3152_p10)
}
  0x37   :  { %54 = dma.hbm_to_vmem [thread:$0]  %s3871_s2, 1024, %s49_s30, [#allocation7], %s3228_s14, %s3228_s14, %s3229_s15  }
  0x38   :  { %s3164_s0 = scalar_lea.vmem %s73_s11, 32  ;;  %p3169_p12 = scmp.lt.s32.totalorder %s73_s11, %s73_s11 }
  0x39   :  { %p3165_p11 = scmp.ne.s32.totalorder %s73_s11, %s3164_s0  ;;  %p3170_p13 = scmp.lt.s32.totalorder %s3164_s0, %s3164_s0 }
  0x3b   :  { %p3171_p0 = por %p3170_p13, %p3169_p12 }
  0x3d   :  { %p3172_p1 = pnand %p3171_p0, %p3165_p11 }
  0x3f   :  { %3175 = shalt.err (!%p3172_p1)
}
  0x40   :  { %s3234_s16 = smov 16   ;;  %s3235_s17 = smov 1  }
  0x41   :  { %78 = dma.hbm_to_vmem [thread:$0]  %s3873_s4, 32, %s73_s11, [#allocation10], %s3234_s16, %s3234_s16, %s3235_s17  }
  0x42   :  { %s3236_s20 = smov [#allocation14]  }
  0x43   :  { %s98_s21 = sshll.u32 %s3236_s20, 4  ;;  %s99_s21 = int_to_ptr.vmem [resolvable:$true] %s98_s21 }
  0x44   :  { %s3184_s22 = scalar_lea.vmem %s99_s21, 2048  ;;  %p3189_p3 = scmp.lt.s32.totalorder %s99_s21, %s99_s21 }
  0x45   :  { %p3185_p2 = scmp.ne.s32.totalorder %s99_s21, %s3184_s22  ;;  %p3190_p4 = scmp.lt.s32.totalorder %s3184_s22, %s3184_s22 }
  0x47   :  { %p3191_p5 = por %p3190_p4, %p3189_p3 }
  0x49   :  { %p3192_p6 = pnand %p3191_p5, %p3185_p2 }
  0x4b   :  { %3195 = shalt.err (!%p3192_p6)
}
  0x4c   :  { %104 = dma.hbm_to_vmem [thread:$0]  %s3876_s7, 2048, %s99_s21, [#allocation13], %s3228_s14, %s3228_s14, %s3229_s15  }
  0x4d   :  { %3216 = dma.done.wait [#allocation4], 1024  }
  0x4e   :  { %3217 = vsyncadd [#allocation4], 4294966272 }
  0x4f   :  { %3218 = dma.done.wait [#allocation7], 2048  }
  0x50   :  { %3219 = vsyncadd [#allocation7], 4294965248 }
  0x51   :  { %3220 = dma.done.wait [#allocation10], 1056  }
  0x52   :  { %3221 = vsyncadd [#allocation10], 4294966240 }
  0x53   :  { %3222 = dma.done.wait [#allocation13], 2560  }
  0x54   :  { %3223 = vsyncadd [#allocation13], 4294964736  ;;  %v3237_v0 = vmov 0.0   ;;  %vm3238_vm0 = vmmov 0   ;;  %vm156_vm1 = vcmask 261120   ;;  %v136_v1 = vld [vmem:[#allocation8 + $0x18] sm:$0xff]  ;;  %v128_v40 = vlaneseq }
  0x55   :  { %2691 = vmatprep.subr.mxu0 %v3237_v0  ;;  %2699 = vmatprep.mubr.msk.f32.mxu0 %vm3238_vm0, %v3237_v0  ;;  %v135_v2 = vld [vmem:[#allocation8 + $0x10] sm:$0xff]  ;;  %v141_v3 = vld [vmem:[#allocation3] sm:$0xff]  ;;  %v134_v4 = vld [vmem:[#allocation8 + $0x8] sm:$0xff]  ;;  %s3239_s4 = smov 64   ;;  %s3240_s7 = smov 32  }
  0x56   :  { %2649 = vmatprep.subr.mxu1 %v136_v1  ;;  %2657 = vmatprep.mubr.msk.f32.mxu1 %vm156_vm1, %v141_v3  ;;  %v3336_v5 = vld [vmem:[#allocation9 + $0x18] sm:$0xff]  ;;  %v133_v6 = vld [vmem:[#allocation8] sm:$0xff]  ;;  %v3339_v7 = vld [vmem:[#allocation9 + $0x10] sm:$0xff]  ;;  %v129_v41 = vand.u32 127, %v128_v40  ;;  %s3241_s14 = smov 96   ;;  %s3242_s25 = smov [#allocation15]  }
  0x57   :  { %2650 = vmatpush3.msra.mxu1 %v136_v1  ;;  %2692 = vmatpush3.msra.mxu0 %v3336_v5  ;;  %v142_v8 = vld [vmem:[#allocation3 + $0x8] sm:$0xff]  ;;  %v143_v10 = vld [vmem:[#allocation3 + $0x10] sm:$0xff]  ;;  %v144_v11 = vld [vmem:[#allocation3 + $0x18] sm:$0xff]  ;;  %s2461_s26 = sshll.u32 %s3242_s25, 4  ;;  %s2462_s26 = int_to_ptr.vmem [resolvable:$true] %s2461_s26 }
  0x58   :  { %2651 = vmatprep.subr.mxu1 %v135_v2  ;;  %2693 = vmatprep.subr.mxu0 %v3237_v0  ;;  %v3343_v9 = vld [vmem:[#allocation9 + $0x8] sm:$0xff]  ;;  %v3352_v12 = vld [vmem:[#allocation9] sm:$0xff]  ;;  %v147_v15 = vld [vmem:[#allocation3 + $0x30] sm:$0xff]  ;;  %vm130_vm2 = vcmp.ge.s32.totalorder %v129_v41, 64  ;;  %vm131_vm3 = vcmp.lt.s32.totalorder %v129_v41, 96  ;;  %s3196_s3 = scalar_lea.vmem %s2462_s26, 128  ;;  %p3201_p8 = scmp.lt.s32.totalorder %s2462_s26, %s2462_s26 }
  0x59   :  { %2652 = vmatpush3.msra.mxu1 %v135_v2  ;;  %2694 = vmatpush3.msra.mxu0 %v3339_v7  ;;  %v145_v13 = vld [vmem:[#allocation3 + $0x20] sm:$0xff]  ;;  %v146_v14 = vld [vmem:[#allocation3 + $0x28] sm:$0xff]  ;;  %v148_v16 = vld [vmem:[#allocation3 + $0x38] sm:$0xff]  ;;  %p3197_p7 = scmp.ne.s32.totalorder %s2462_s26, %s3196_s3  ;;  %p3202_p9 = scmp.lt.s32.totalorder %s3196_s3, %s3196_s3 }
  0x5a   :  { %2653 = vmatprep.subr.mxu1 %v134_v4  ;;  %2695 = vmatprep.subr.mxu0 %v3237_v0  ;;  %v2473_v17 = vld [vmem:[#allocation11] ss:$0 sm:$0xff]  ;;  %vm3395_vm4 = vmand %vm130_vm2, %vm131_vm3  ;;  %v2300_v42 = vld [vmem:[#allocation14 + $0x68] sm:$0xff] }
  0x5b   :  { %2654 = vmatpush3.msra.mxu1 %v134_v4  ;;  %2696 = vmatpush3.msra.mxu0 %v3343_v9  ;;  %v3405_v52 = vld [vmem:[#allocation6] sm:$0xff]  ;;  %p3203_p10 = por %p3202_p9, %p3201_p8 }
  0x5c   :  { %2655 = vmatprep.subr.mxu1 %v133_v6  ;;  %2697 = vmatprep.subr.mxu0 %v3237_v0  ;;  %vm386_vm5 = vcmp.gt.f32.partialorder %v3405_v52, 0.5 }
  0x5d   :  { %2656 = vmatpush3.msra.mxu1 %v133_v6  ;;  %2698 = vmatpush3.msra.mxu0 %v3352_v12  ;;  %p3204_p11 = pnand %p3203_p10, %p3197_p7 }
  0x5e   :  { %2658 = vmatmul.mubr.msk.f32.vlgmr.msra.gmra.mxu1 %vm156_vm1, %v142_v8  ;;  %2669 = vmatprep.subr.mxu1 %v3237_v0 }
  0x5f   :  { %2670 = vmatpush3.msra.mxu1 %v3336_v5  ;;  %2660 = vmatprep.mubr.msk.f32.mxu1 %vm156_vm1, %v143_v10 }
  0x60   :  { %2671 = vmatprep.subr.mxu1 %v3237_v0  ;;  %2713 = vmatprep.subr.mxu0 %v3237_v0 }
  0x61   :  { %2672 = vmatpush3.msra.mxu1 %v3339_v7 }
  0x62   :  { %2661 = vmatmul.mubr.msk.f32.gmra.mxu1 %vm156_vm1, %v144_v11  ;;  %2673 = vmatprep.subr.mxu1 %v3237_v0 }
  0x63   :  { %2663 = vmatprep.mubr.msk.f32.mxu1 %vm156_vm1, %v145_v13  ;;  %2674 = vmatpush3.msra.mxu1 %v3343_v9 }
  0x64   :  { %2675 = vmatprep.subr.mxu1 %v3237_v0 }
  0x65   :  { %2676 = vmatpush3.msra.mxu1 %v3352_v12 }
  0x66   :  { %2664 = vmatmul.mubr.msk.f32.gmra.mxu1 %vm156_vm1, %v146_v14  ;;  %2680 = vmatprep.subr.mxu1 %v3237_v0 }
  0x67   :  { %2666 = vmatprep.mubr.msk.f32.mxu1 %vm156_vm1, %v147_v15 }
  0x6a   :  { %2667 = vmatmul.mubr.msk.f32.gmra.mxu1 %vm156_vm1, %v148_v16  ;;  %v3433_v16 = vld [vmem:[#allocation6 + $0x8] sm:$0xff] }
  0x6b   :  { %2677 = vmatprep.mubr.msk.f32.mxu1 %vm3238_vm0, %v3237_v0  ;;  %vm503_vm6 = vcmp.gt.f32.partialorder %v3433_v16, 0.5 }
  0x6e   :  { %2678 = vmatmul.mubr.f32.vlgmr.msra.gmra.mxu1 %v3237_v0 }
  0x6f   :  { %2681 = vmatpush3.msra.mxu1 %v3336_v5  ;;  %2688 = vmatprep.mubr.msk.f32.mxu1 %vm3238_vm0, %v3237_v0 }
  0x70   :  { %2682 = vmatprep.subr.mxu1 %v3237_v0 }
  0x71   :  { %2683 = vmatpush3.msra.mxu1 %v3339_v7 }
  0x72   :  { %2684 = vmatprep.subr.mxu1 %v3237_v0 }
  0x73   :  { %2685 = vmatpush3.msra.mxu1 %v3343_v9 }
  0x74   :  { %2686 = vmatprep.subr.mxu1 %v3237_v0 }
  0x75   :  { %2687 = vmatpush3.msra.mxu1 %v3352_v12 }
  0x76   :  { %2702 = vmatprep.subr.mxu1 %v3237_v0 }
 0x11e   :  { %v2659_v18 = vpop.f32.mrf.mxu1 }
 0x11f   :  { %v3381_v19 = vadd.f32 %v2659_v18, %v2473_v17 }
 0x120   :  { %v247_v20 = vpop.f32.mrf.mxu1 }
 0x121   :  { %v248_v32 = vadd.f32 %v2473_v17, %v247_v20 }
 0x122   :  { %v2662_v21 = vpop.f32.mrf.mxu1 }
 0x123   :  { %v3383_v22 = vadd.f32 %v2662_v21, %v2473_v17 }
 0x124   :  { %v257_v23 = vpop.f32.mrf.mxu1 }
 0x125   :  { %v3385_v24 = vadd.f32 %v2473_v17, %v257_v23 }
 0x126   :  { %v2665_v25 = vpop.f32.mrf.mxu1 }
 0x127   :  { %v3387_v26 = vadd.f32 %v2665_v25, %v2473_v17 }
 0x128   :  { %v267_v27 = vpop.f32.mrf.mxu1 }
 0x129   :  { %v3389_v28 = vadd.f32 %v2473_v17, %v267_v27 }
 0x12a   :  { %v2668_v29 = vpop.f32.mrf.mxu1 }
 0x12b   :  { %v3391_v30 = vadd.f32 %v2668_v29, %v2473_v17 }
 0x12c   :  { %v277_v31 = vpop.f32.mrf.mxu1 }
 0x12d   :  { %v3393_v33 = vadd.f32 %v2473_v17, %v277_v31 }
 0x12e   :  { %v355_v34 = vpop.f32.mrf.mxu1 }
 0x12f   :  { %v359_v35 = vadd.f32 %v355_v34, %v248_v32 }
 0x130   :  { %v2679_v36 = vpop.f32.mrf.mxu1 }
 0x131   :  { %v2482_v37 = vmul.f32 -1.442695, %v359_v35 }
 0x133   :  { %2928 = vpow2.f32 %v2482_v37 }
 0x134   :  { %2930 = vtanh.f32 %v359_v35 }
 0x140   :  { %v2929_v38 = vpop.eup %2928 }
 0x141   :  { %v364_v39 = vadd.f32 1.0, %v2929_v38  ;;  %v2931_v43 = vpop.eup %2930 }
 0x143   :  { %2932 = vrcp.f32 %v364_v39 }
 0x150   :  { %v2933_v44 = vpop.eup %2932 }
 0x151   :  { %v367_v45 = vsel %vm3395_vm4, %v2931_v43, %v2933_v44 }
 0x152   :  { %370 = vrot.lane.b32.xlu0 %v367_v45, %s3239_s4  ;;  %v368_v48 = vmul.f32 0.0, %v367_v45 }
 0x1c4   :  { %v371_v46 = vpop.permute.xlu0 %370 }
 0x1c5   :  { %v373_v47 = vmul.f32 %v371_v46, %v367_v45 }
 0x1c7   :  { %375 = vrot.lane.b32.xlu0 %v373_v47, %s3240_s7 }
 0x239   :  { %v376_v49 = vpop.permute.xlu0 %375 }
 0x23a   :  { %v378_v50 = vadd.f32 %v376_v49, %v368_v48 }
 0x23c   :  { %2934 = vtanh.f32 %v378_v50  ;;  %393 = vrot.lane.b32.xlu0 %v378_v50, %s3241_s14 }
 0x249   :  { %v2935_v51 = vpop.eup %2934 }
 0x24a   :  { %381 = vrot.lane.b32.xlu1 %v2935_v51, %s3239_s4 }
 0x2ae   :  { %v394_v53 = vpop.permute.xlu0 %393 }
 0x2af   :  { %v396_v54 = vsel %vm386_vm5, %v394_v53, 0.0 }
 0x2b0   :  { %481 = vrot.lane.b32.xlu0 %v396_v54, %s3240_s7 }
 0x2bc   :  { %v382_v55 = vpop.permute.xlu1 %381 }
 0x2bd   :  { %v384_v56 = vmul.f32 %v382_v55, %v367_v45  ;;  %v3461_v45 = vld [vmem:[#allocation6 + $0x10] sm:$0xff] }
 0x2be   :  { %vm621_vm7 = vcmp.gt.f32.partialorder %v3461_v45, 0.5 }
 0x2bf   :  { %388 = vrot.lane.b32.xlu1 %v384_v56, %s3240_s7 }
 0x322   :  { %v482_v10 = vpop.permute.xlu0 %481 }
 0x331   :  { %v389_v57 = vpop.permute.xlu1 %388 }
 0x332   :  { %v391_v58 = vsel %vm386_vm5, %v389_v57, 0.0 }
 0x333   :  { %397 = vst.msk [vmem:[#allocation2] sm:$0xff] %vm156_vm1, %v391_v58  ;;  %2689 = vmatmul.mubr.msk.f32.vlgmr.msra.gmra.mxu1 %vm156_vm1, %v391_v58 }
 0x334   :  { %2703 = vmatpush3.msra.mxu1 %v3336_v5  ;;  %2710 = vmatprep.mubr.msk.f32.mxu1 %vm3238_vm0, %v3237_v0 }
 0x335   :  { %2704 = vmatprep.subr.mxu1 %v3237_v0 }
 0x336   :  { %2705 = vmatpush3.msra.mxu1 %v3339_v7 }
 0x337   :  { %2706 = vmatprep.subr.mxu1 %v3237_v0 }
 0x338   :  { %2707 = vmatpush3.msra.mxu1 %v3343_v9 }
 0x339   :  { %2708 = vmatprep.subr.mxu1 %v3237_v0 }
 0x33a   :  { %2709 = vmatpush3.msra.mxu1 %v3352_v12 }
 0x33b   :  { %2724 = vmatprep.subr.mxu1 %v3237_v0 }
 0x3f3   :  { %v467_v59 = vpop.f32.mrf.mxu1 }
 0x3f4   :  { %v471_v60 = vadd.f32 %v467_v59, %v3381_v19 }
 0x3f5   :  { %v2690_v61 = vpop.f32.mrf.mxu1 }
 0x3f6   :  { %v2484_v62 = vmul.f32 -1.442695, %v471_v60 }
 0x3f8   :  { %2936 = vpow2.f32 %v2484_v62 }
 0x3f9   :  { %2938 = vtanh.f32 %v471_v60 }
 0x405   :  { %v2937_v63 = vpop.eup %2936 }
 0x406   :  { %v476_v1 = vadd.f32 1.0, %v2937_v63  ;;  %v2939_v2 = vpop.eup %2938 }
 0x408   :  { %2940 = vrcp.f32 %v476_v1 }
 0x415   :  { %v2941_v3 = vpop.eup %2940 }
 0x416   :  { %v479_v4 = vsel %vm3395_vm4, %v2939_v2, %v2941_v3 }
 0x417   :  { %486 = vrot.lane.b32.xlu1 %v479_v4, %s3239_s4  ;;  %v484_v11 = vmul.f32 %v482_v10, %v479_v4 }
 0x489   :  { %v487_v6 = vpop.permute.xlu1 %486 }
 0x48a   :  { %v489_v8 = vmul.f32 %v487_v6, %v479_v4  ;;  %v3489_v6 = vld [vmem:[#allocation6 + $0x18] sm:$0xff] }
 0x48b   :  { %vm739_vm8 = vcmp.gt.f32.partialorder %v3489_v6, 0.5 }
 0x48c   :  { %491 = vrot.lane.b32.xlu1 %v489_v8, %s3240_s7 }
 0x4fe   :  { %v492_v13 = vpop.permute.xlu1 %491 }
 0x4ff   :  { %v494_v14 = vadd.f32 %v492_v13, %v484_v11 }
 0x501   :  { %2942 = vtanh.f32 %v494_v14 }
 0x50e   :  { %v2943_v15 = vpop.eup %2942 }
 0x50f   :  { %497 = vrot.lane.b32.xlu0 %v2943_v15, %s3239_s4 }
 0x513   :  { %510 = vrot.lane.b32.xlu0 %v494_v14, %s3241_s14 }
 0x581   :  { %v498_v17 = vpop.permute.xlu0 %497 }
 0x582   :  { %v500_v18 = vmul.f32 %v498_v17, %v479_v4 }
 0x584   :  { %505 = vrot.lane.b32.xlu1 %v500_v18, %s3240_s7 }
 0x585   :  { %v511_v19 = vpop.permute.xlu0 %510 }
 0x586   :  { %v513_v20 = vsel %vm503_vm6, %v511_v19, %v396_v54 }
 0x587   :  { %599 = vrot.lane.b32.xlu0 %v513_v20, %s3240_s7 }
 0x5f6   :  { %v506_v21 = vpop.permute.xlu1 %505 }
 0x5f7   :  { %v508_v23 = vsel %vm503_vm6, %v506_v21, %v391_v58 }
 0x5f8   :  { %515 = vst.msk [vmem:[#allocation2 + $0x8] sm:$0xff] %vm156_vm1, %v508_v23  ;;  %2700 = vmatmul.mubr.msk.f32.vlgmr.msra.gmra.mxu0 %vm156_vm1, %v508_v23 }
 0x5f9   :  { %2714 = vmatpush3.msra.mxu0 %v3336_v5  ;;  %2721 = vmatprep.mubr.msk.f32.mxu0 %vm3238_vm0, %v3237_v0  ;;  %v600_v40 = vpop.permute.xlu0 %599 }
 0x5fa   :  { %2715 = vmatprep.subr.mxu0 %v3237_v0 }
 0x5fb   :  { %2716 = vmatpush3.msra.mxu0 %v3339_v7 }
 0x5fc   :  { %2717 = vmatprep.subr.mxu0 %v3237_v0 }
 0x5fd   :  { %2718 = vmatpush3.msra.mxu0 %v3343_v9 }
 0x5fe   :  { %2719 = vmatprep.subr.mxu0 %v3237_v0 }
 0x5ff   :  { %2720 = vmatpush3.msra.mxu0 %v3352_v12 }
 0x600   :  { %2735 = vmatprep.subr.mxu0 %v3237_v0 }
 0x6b8   :  { %v585_v25 = vpop.f32.mrf.mxu0 }
 0x6b9   :  { %v589_v27 = vadd.f32 %v585_v25, %v3385_v24 }
 0x6ba   :  { %v2701_v29 = vpop.f32.mrf.mxu0 }
 0x6bb   :  { %v2486_v31 = vmul.f32 -1.442695, %v589_v27 }
 0x6bd   :  { %2944 = vpow2.f32 %v2486_v31 }
 0x6be   :  { %2946 = vtanh.f32 %v589_v27 }
 0x6ca   :  { %v2945_v32 = vpop.eup %2944 }
 0x6cb   :  { %v594_v34 = vadd.f32 1.0, %v2945_v32  ;;  %v2947_v35 = vpop.eup %2946 }
 0x6cd   :  { %2948 = vrcp.f32 %v594_v34 }
 0x6da   :  { %v2949_v36 = vpop.eup %2948 }
 0x6db   :  { %v597_v37 = vsel %vm3395_vm4, %v2947_v35, %v2949_v36 }
 0x6dc   :  { %604 = vrot.lane.b32.xlu1 %v597_v37, %s3239_s4  ;;  %v602_v24 = vmul.f32 %v600_v40, %v597_v37 }
 0x74e   :  { %v605_v38 = vpop.permute.xlu1 %604 }
 0x74f   :  { %v607_v39 = vmul.f32 %v605_v38, %v597_v37  ;;  %v3516_v38 = vld [vmem:[#allocation6 + $0x20] sm:$0xff] }
 0x750   :  { %vm857_vm9 = vcmp.gt.f32.partialorder %v3516_v38, 0.5 }
 0x751   :  { %609 = vrot.lane.b32.xlu1 %v607_v39, %s3240_s7 }
 0x7c3   :  { %v610_v41 = vpop.permute.xlu1 %609 }
 0x7c4   :  { %v612_v43 = vadd.f32 %v610_v41, %v602_v24 }
 0x7c6   :  { %2950 = vtanh.f32 %v612_v43 }
 0x7d3   :  { %v2951_v44 = vpop.eup %2950 }
 0x7d4   :  { %615 = vrot.lane.b32.xlu0 %v2951_v44, %s3239_s4 }
 0x7d8   :  { %628 = vrot.lane.b32.xlu0 %v612_v43, %s3241_s14 }
 0x846   :  { %v616_v46 = vpop.permute.xlu0 %615 }
 0x847   :  { %v618_v47 = vmul.f32 %v616_v46, %v597_v37 }
 0x849   :  { %623 = vrot.lane.b32.xlu1 %v618_v47, %s3240_s7 }
 0x84a   :  { %v629_v48 = vpop.permute.xlu0 %628 }
 0x84b   :  { %v631_v49 = vsel %vm621_vm7, %v629_v48, %v513_v20 }
 0x84c   :  { %717 = vrot.lane.b32.xlu0 %v631_v49, %s3240_s7 }
 0x8bb   :  { %v624_v50 = vpop.permute.xlu1 %623 }
 0x8bc   :  { %v626_v51 = vsel %vm621_vm7, %v624_v50, %v508_v23 }
 0x8bd   :  { %633 = vst.msk [vmem:[#allocation2 + $0x10] sm:$0xff] %vm156_vm1, %v626_v51  ;;  %2711 = vmatmul.mubr.msk.f32.vlgmr.msra.gmra.mxu1 %vm156_vm1, %v626_v51 }
 0x8be   :  { %2725 = vmatpush3.msra.mxu1 %v3336_v5  ;;  %2732 = vmatprep.mubr.msk.f32.mxu1 %vm3238_vm0, %v3237_v0  ;;  %v718_v1 = vpop.permute.xlu0 %717 }
 0x8bf   :  { %2726 = vmatprep.subr.mxu1 %v3237_v0 }
 0x8c0   :  { %2727 = vmatpush3.msra.mxu1 %v3339_v7 }
 0x8c1   :  { %2728 = vmatprep.subr.mxu1 %v3237_v0 }
 0x8c2   :  { %2729 = vmatpush3.msra.mxu1 %v3343_v9 }
 0x8c3   :  { %2730 = vmatprep.subr.mxu1 %v3237_v0 }
 0x8c4   :  { %2731 = vmatpush3.msra.mxu1 %v3352_v12 }
 0x8c5   :  { %2746 = vmatprep.subr.mxu1 %v3237_v0 }
 0x97d   :  { %v703_v53 = vpop.f32.mrf.mxu1 }
 0x97e   :  { %v707_v54 = vadd.f32 %v703_v53, %v3383_v22 }
 0x97f   :  { %v2712_v55 = vpop.f32.mrf.mxu1 }
 0x980   :  { %v2488_v56 = vmul.f32 -1.442695, %v707_v54 }
 0x982   :  { %2952 = vpow2.f32 %v2488_v56 }
 0x983   :  { %2954 = vtanh.f32 %v707_v54 }
 0x98f   :  { %v2953_v57 = vpop.eup %2952 }
 0x990   :  { %v712_v58 = vadd.f32 1.0, %v2953_v57  ;;  %v2955_v59 = vpop.eup %2954 }
 0x992   :  { %2956 = vrcp.f32 %v712_v58  ;;  %v1223_v58 = vld [vmem:[#allocation8 + $0x38] sm:$0xff] }
 0x99f   :  { %v2957_v60 = vpop.eup %2956 }
 0x9a0   :  { %v715_v61 = vsel %vm3395_vm4, %v2955_v59, %v2957_v60  ;;  %v3544_v59 = vld [vmem:[#allocation6 + $0x28] sm:$0xff] }
 0x9a1   :  { %722 = vrot.lane.b32.xlu1 %v715_v61, %s3239_s4  ;;  %v720_v22 = vmul.f32 %v718_v1, %v715_v61  ;;  %vm975_vm10 = vcmp.gt.f32.partialorder %v3544_v59, 0.5 }
 0xa13   :  { %v723_v62 = vpop.permute.xlu1 %722 }
 0xa14   :  { %v725_v63 = vmul.f32 %v723_v62, %v715_v61 }
 0xa16   :  { %727 = vrot.lane.b32.xlu1 %v725_v63, %s3240_s7 }
 0xa88   :  { %v728_v2 = vpop.permute.xlu1 %727 }
 0xa89   :  { %v730_v3 = vadd.f32 %v728_v2, %v720_v22  ;;  %v1222_v2 = vld [vmem:[#allocation8 + $0x30] sm:$0xff] }
 0xa8b   :  { %2958 = vtanh.f32 %v730_v3 }
 0xa98   :  { %v2959_v4 = vpop.eup %2958 }
 0xa99   :  { %733 = vrot.lane.b32.xlu0 %v2959_v4, %s3239_s4  ;;  %v1221_v4 = vld [vmem:[#allocation8 + $0x28] sm:$0xff] }
 0xa9d   :  { %746 = vrot.lane.b32.xlu0 %v730_v3, %s3241_s14  ;;  %v1229_v3 = vld [vmem:[#allocation2] sm:$0xff] }
 0xb0b   :  { %v734_v8 = vpop.permute.xlu0 %733 }
 0xb0c   :  { %v736_v10 = vmul.f32 %v734_v8, %v715_v61  ;;  %v1220_v8 = vld [vmem:[#allocation8 + $0x20] sm:$0xff] }
 0xb0e   :  { %741 = vrot.lane.b32.xlu1 %v736_v10, %s3240_s7  ;;  %v1230_v10 = vld [vmem:[#allocation2 + $0x8] sm:$0xff] }
 0xb0f   :  { %v747_v11 = vpop.permute.xlu0 %746 }
 0xb10   :  { %v749_v13 = vsel %vm739_vm8, %v747_v11, %v631_v49  ;;  %v1231_v11 = vld [vmem:[#allocation2 + $0x10] sm:$0xff] }
 0xb11   :  { %835 = vrot.lane.b32.xlu0 %v749_v13, %s3240_s7 }
 0xb80   :  { %v742_v14 = vpop.permute.xlu1 %741 }
 0xb81   :  { %v744_v15 = vsel %vm739_vm8, %v742_v14, %v626_v51 }
 0xb82   :  { %751 = vst.msk [vmem:[#allocation2 + $0x18] sm:$0xff] %vm156_vm1, %v744_v15  ;;  %2722 = vmatmul.mubr.msk.f32.vlgmr.msra.gmra.mxu0 %vm156_vm1, %v744_v15 }
 0xb83   :  { %2736 = vmatpush3.msra.mxu0 %v3336_v5  ;;  %2743 = vmatprep.mubr.msk.f32.mxu0 %vm3238_vm0, %v3237_v0  ;;  %v836_v34 = vpop.permute.xlu0 %835 }
 0xb84   :  { %2737 = vmatprep.subr.mxu0 %v3237_v0 }
 0xb85   :  { %2738 = vmatpush3.msra.mxu0 %v3339_v7 }
 0xb86   :  { %2739 = vmatprep.subr.mxu0 %v3237_v0 }
 0xb87   :  { %2740 = vmatpush3.msra.mxu0 %v3343_v9 }
 0xb88   :  { %2741 = vmatprep.subr.mxu0 %v3237_v0 }
 0xb89   :  { %2742 = vmatpush3.msra.mxu0 %v3352_v12 }
 0xb8a   :  { %2757 = vmatprep.subr.mxu0 %v1223_v58 }
 0xc42   :  { %v821_v17 = vpop.f32.mrf.mxu0 }
 0xc43   :  { %v825_v18 = vadd.f32 %v821_v17, %v3389_v28 }
 0xc44   :  { %v2723_v19 = vpop.f32.mrf.mxu0 }
 0xc45   :  { %v2490_v20 = vmul.f32 -1.442695, %v825_v18 }
 0xc47   :  { %2960 = vpow2.f32 %v2490_v20 }
 0xc48   :  { %2962 = vtanh.f32 %v825_v18 }
 0xc54   :  { %v2961_v21 = vpop.eup %2960 }
 0xc55   :  { %v830_v23 = vadd.f32 1.0, %v2961_v21  ;;  %v2963_v25 = vpop.eup %2962 }
 0xc57   :  { %2964 = vrcp.f32 %v830_v23 }
 0xc64   :  { %v2965_v27 = vpop.eup %2964 }
 0xc65   :  { %v833_v29 = vsel %vm3395_vm4, %v2963_v25, %v2965_v27 }
 0xc66   :  { %840 = vrot.lane.b32.xlu1 %v833_v29, %s3239_s4  ;;  %v838_v28 = vmul.f32 %v836_v34, %v833_v29 }
 0xcd8   :  { %v841_v31 = vpop.permute.xlu1 %840 }
 0xcd9   :  { %v843_v32 = vmul.f32 %v841_v31, %v833_v29 }
 0xcdb   :  { %845 = vrot.lane.b32.xlu1 %v843_v32, %s3240_s7 }
 0xd4d   :  { %v846_v35 = vpop.permute.xlu1 %845 }
 0xd4e   :  { %v848_v36 = vadd.f32 %v846_v35, %v838_v28 }
 0xd50   :  { %2966 = vtanh.f32 %v848_v36 }
 0xd5d   :  { %v2967_v37 = vpop.eup %2966 }
 0xd5e   :  { %851 = vrot.lane.b32.xlu0 %v2967_v37, %s3239_s4  ;;  %v3578_v37 = vld [vmem:[#allocation9 + $0x38] sm:$0xff] }
 0xd62   :  { %864 = vrot.lane.b32.xlu0 %v848_v36, %s3241_s14 }
 0xdd0   :  { %v852_v39 = vpop.permute.xlu0 %851 }
 0xdd1   :  { %v854_v40 = vmul.f32 %v852_v39, %v833_v29  ;;  %v3581_v39 = vld [vmem:[#allocation9 + $0x30] sm:$0xff] }
 0xdd3   :  { %859 = vrot.lane.b32.xlu1 %v854_v40, %s3240_s7  ;;  %v3585_v40 = vld [vmem:[#allocation9 + $0x28] sm:$0xff] }
 0xdd4   :  { %v865_v24 = vpop.permute.xlu0 %864 }
 0xdd5   :  { %v867_v41 = vsel %vm857_vm9, %v865_v24, %v749_v13  ;;  %v1232_v13 = vld [vmem:[#allocation2 + $0x18] sm:$0xff]  ;;  %v3589_v24 = vld [vmem:[#allocation9 + $0x20] sm:$0xff] }
 0xdd6   :  { %953 = vrot.lane.b32.xlu0 %v867_v41, %s3240_s7 }
 0xe45   :  { %v860_v43 = vpop.permute.xlu1 %859 }
 0xe46   :  { %v862_v44 = vsel %vm857_vm9, %v860_v43, %v744_v15 }
 0xe47   :  { %869 = vst.msk [vmem:[#allocation2 + $0x20] sm:$0xff] %vm156_vm1, %v862_v44  ;;  %2733 = vmatmul.mubr.msk.f32.vlgmr.msra.gmra.mxu1 %vm156_vm1, %v862_v44 }
 0xe48   :  { %2747 = vmatpush3.msra.mxu1 %v3336_v5  ;;  %2754 = vmatprep.mubr.msk.f32.mxu1 %vm3238_vm0, %v3237_v0  ;;  %v954_v54 = vpop.permute.xlu0 %953 }
 0xe49   :  { %2748 = vmatprep.subr.mxu1 %v3237_v0 }
 0xe4a   :  { %2749 = vmatpush3.msra.mxu1 %v3339_v7 }
 0xe4b   :  { %2750 = vmatprep.subr.mxu1 %v3237_v0 }
 0xe4c   :  { %2751 = vmatpush3.msra.mxu1 %v3343_v9 }
 0xe4d   :  { %2752 = vmatprep.subr.mxu1 %v3237_v0 }
 0xe4e   :  { %2753 = vmatpush3.msra.mxu1 %v3352_v12  ;;  %v1233_v14 = vld [vmem:[#allocation2 + $0x20] sm:$0xff] }
 0xe4f   :  { %2777 = vmatprep.subr.mxu1 %v3237_v0 }
 0xf07   :  { %v939_v46 = vpop.f32.mrf.mxu1 }
 0xf08   :  { %v943_v5 = vadd.f32 %v939_v46, %v3387_v26 }
 0xf09   :  { %v2734_v47 = vpop.f32.mrf.mxu1 }
 0xf0a   :  { %v2492_v48 = vmul.f32 -1.442695, %v943_v5 }
 0xf0c   :  { %2968 = vpow2.f32 %v2492_v48 }
 0xf0d   :  { %2970 = vtanh.f32 %v943_v5 }
 0xf19   :  { %v2969_v49 = vpop.eup %2968 }
 0xf1a   :  { %v948_v50 = vadd.f32 1.0, %v2969_v49  ;;  %v2971_v7 = vpop.eup %2970 }
 0xf1c   :  { %2972 = vrcp.f32 %v948_v50 }
 0xf29   :  { %v2973_v51 = vpop.eup %2972 }
 0xf2a   :  { %v951_v9 = vsel %vm3395_vm4, %v2971_v7, %v2973_v51 }
 0xf2b   :  { %958 = vrot.lane.b32.xlu1 %v951_v9, %s3239_s4  ;;  %v956_v26 = vmul.f32 %v954_v54, %v951_v9 }
 0xf9d   :  { %v959_v12 = vpop.permute.xlu1 %958 }
 0xf9e   :  { %v961_v53 = vmul.f32 %v959_v12, %v951_v9 }
 0xfa0   :  { %963 = vrot.lane.b32.xlu1 %v961_v53, %s3240_s7 }
0x1012   :  { %v964_v55 = vpop.permute.xlu1 %963 }
0x1013   :  { %v966_v56 = vadd.f32 %v964_v55, %v956_v26 }
0x1015   :  { %2974 = vtanh.f32 %v966_v56 }
0x1022   :  { %v2975_v57 = vpop.eup %2974 }
0x1023   :  { %969 = vrot.lane.b32.xlu0 %v2975_v57, %s3239_s4 }
0x1027   :  { %982 = vrot.lane.b32.xlu0 %v966_v56, %s3241_s14 }
0x1095   :  { %v970_v60 = vpop.permute.xlu0 %969 }
0x1096   :  { %v972_v61 = vmul.f32 %v970_v60, %v951_v9  ;;  %v3630_v9 = vld [vmem:[#allocation11 + $0x1] ss:$0 sm:$0xff] }
0x1098   :  { %977 = vrot.lane.b32.xlu1 %v972_v61, %s3240_s7 }
0x1099   :  { %v983_v62 = vpop.permute.xlu0 %982 }
0x109a   :  { %v3550_v63 = vsel %vm975_vm10, %v983_v62, %v867_v41 }
0x109b   :  { %1071 = vrot.lane.b32.xlu0 %v3550_v63, %s3240_s7 }
0x110a   :  { %v978_v1 = vpop.permute.xlu1 %977 }
0x110b   :  { %v3556_v22 = vsel %vm975_vm10, %v978_v1, %v862_v44  ;;  %v3595_v44 = vld [vmem:[#allocation6 + $0x30] sm:$0xff] }
0x110c   :  { %987 = vst.msk [vmem:[#allocation2 + $0x28] sm:$0xff] %vm156_vm1, %v3556_v22  ;;  %2744 = vmatmul.mubr.msk.f32.vlgmr.msra.gmra.mxu0 %vm156_vm1, %v3556_v22  ;;  %vm1093_vm11 = vcmp.gt.f32.partialorder %v3595_v44, 0.5 }
0x110d   :  { %2758 = vmatpush3.msra.mxu0 %v1223_v58  ;;  %2765 = vmatprep.mubr.msk.f32.mxu0 %vm156_vm1, %v1229_v3  ;;  %v1072_v34 = vpop.permute.xlu0 %1071 }
0x110e   :  { %2759 = vmatprep.subr.mxu0 %v1222_v2 }
0x110f   :  { %2760 = vmatpush3.msra.mxu0 %v1222_v2 }
0x1110   :  { %2761 = vmatprep.subr.mxu0 %v1221_v4 }
0x1111   :  { %2762 = vmatpush3.msra.mxu0 %v1221_v4 }
0x1112   :  { %2763 = vmatprep.subr.mxu0 %v1220_v8 }
0x1113   :  { %2764 = vmatpush3.msra.mxu0 %v1220_v8  ;;  %v1234_v15 = vld [vmem:[#allocation2 + $0x28] sm:$0xff] }
0x1114   :  { %2766 = vmatmul.mubr.msk.f32.vlgmr.msra.gmra.mxu0 %vm156_vm1, %v1230_v10  ;;  %2799 = vmatprep.subr.mxu0 %v3237_v0 }
0x1115   :  { %2768 = vmatprep.mubr.msk.f32.mxu0 %vm156_vm1, %v1231_v11  ;;  %2800 = vmatpush3.msra.mxu0 %v3578_v37 }
0x1116   :  { %2801 = vmatprep.subr.mxu0 %v3237_v0 }
0x1117   :  { %2802 = vmatpush3.msra.mxu0 %v3581_v39 }
0x1118   :  { %2769 = vmatmul.mubr.msk.f32.gmra.mxu0 %vm156_vm1, %v1232_v13  ;;  %2803 = vmatprep.subr.mxu0 %v3237_v0 }
0x1119   :  { %2771 = vmatprep.mubr.msk.f32.mxu0 %vm156_vm1, %v1233_v14  ;;  %2804 = vmatpush3.msra.mxu0 %v3585_v40 }
0x111a   :  { %2805 = vmatprep.subr.mxu0 %v3237_v0 }
0x111b   :  { %2806 = vmatpush3.msra.mxu0 %v3589_v24 }
0x111c   :  { %2772 = vmatmul.mubr.msk.f32.gmra.mxu0 %vm156_vm1, %v1234_v15  ;;  %2821 = vmatprep.subr.mxu0 %v3237_v0 }
0x11cc   :  { %v1057_v17 = vpop.f32.mrf.mxu0 }
0x11cd   :  { %v1061_v18 = vadd.f32 %v1057_v17, %v3393_v33 }
0x11ce   :  { %v2745_v19 = vpop.f32.mrf.mxu0 }
0x11cf   :  { %v2494_v20 = vmul.f32 -1.442695, %v1061_v18 }
0x11d1   :  { %2976 = vpow2.f32 %v2494_v20 }
0x11d2   :  { %2978 = vtanh.f32 %v1061_v18 }
0x11d4   :  { %v2767_v48 = vpop.f32.mrf.mxu0 }
0x11d5   :  { %v1341_v52 = vadd.f32 %v2767_v48, %v3630_v9 }
0x11d6   :  { %v1335_v51 = vpop.f32.mrf.mxu0 }
0x11d7   :  { %v1336_v12 = vadd.f32 %v3630_v9, %v1335_v51 }
0x11d8   :  { %v2770_v16 = vpop.f32.mrf.mxu0 }
0x11d9   :  { %v1351_v45 = vadd.f32 %v2770_v16, %v3630_v9 }
0x11de   :  { %v2977_v21 = vpop.eup %2976 }
0x11df   :  { %v1066_v23 = vadd.f32 1.0, %v2977_v21  ;;  %v2979_v25 = vpop.eup %2978 }
0x11e1   :  { %2980 = vrcp.f32 %v1066_v23 }
0x11ee   :  { %v2981_v27 = vpop.eup %2980 }
0x11ef   :  { %v1069_v29 = vsel %vm3395_vm4, %v2979_v25, %v2981_v27 }
0x11f0   :  { %1076 = vrot.lane.b32.xlu1 %v1069_v29, %s3239_s4  ;;  %v1074_v33 = vmul.f32 %v1072_v34, %v1069_v29 }
0x1262   :  { %v1077_v31 = vpop.permute.xlu1 %1076 }
0x1263   :  { %v1079_v32 = vmul.f32 %v1077_v31, %v1069_v29 }
0x1265   :  { %1081 = vrot.lane.b32.xlu1 %v1079_v32, %s3240_s7 }
0x12d7   :  { %v1082_v28 = vpop.permute.xlu1 %1081 }
0x12d8   :  { %v3574_v35 = vadd.f32 %v1082_v28, %v1074_v33 }
0x12da   :  { %2982 = vtanh.f32 %v3574_v35 }
0x12e7   :  { %v2983_v36 = vpop.eup %2982 }
0x12e8   :  { %1087 = vrot.lane.b32.xlu0 %v2983_v36, %s3239_s4 }
0x135a   :  { %v1088_v41 = vpop.permute.xlu0 %1087 }
0x135b   :  { %v1090_v43 = vmul.f32 %v1088_v41, %v1069_v29 }
0x135d   :  { %1095 = vrot.lane.b32.xlu1 %v1090_v43, %s3240_s7 }
0x13cf   :  { %v1096_v46 = vpop.permute.xlu1 %1095 }
0x13d0   :  { %v3601_v5 = vsel %vm1093_vm11, %v1096_v46, %v3556_v22 }
0x13d1   :  { %1105 = vst.msk [vmem:[#allocation2 + $0x30] sm:$0xff] %vm156_vm1, %v3601_v5  ;;  %2755 = vmatmul.mubr.msk.f32.vlgmr.msra.gmra.mxu1 %vm156_vm1, %v3601_v5 }
0x13d2   :  { %2778 = vmatpush3.msra.mxu1 %v3578_v37  ;;  %2785 = vmatprep.mubr.msk.f32.mxu1 %vm3238_vm0, %v3237_v0 }
0x13d3   :  { %2779 = vmatprep.subr.mxu1 %v3237_v0 }
0x13d4   :  { %2780 = vmatpush3.msra.mxu1 %v3581_v39 }
0x13d5   :  { %2781 = vmatprep.subr.mxu1 %v3237_v0 }
0x13d6   :  { %2782 = vmatpush3.msra.mxu1 %v3585_v40 }
0x13d7   :  { %2783 = vmatprep.subr.mxu1 %v3237_v0 }
0x13d8   :  { %2784 = vmatpush3.msra.mxu1 %v3589_v24  ;;  %v1235_v47 = vld [vmem:[#allocation2 + $0x30] sm:$0xff] }
0x13d9   :  { %2786 = vmatmul.mubr.f32.vlgmr.msra.gmra.mxu1 %v3237_v0  ;;  %2774 = vmatprep.mubr.msk.f32.mxu0 %vm156_vm1, %v1235_v47 }
0x13da   :  { %2788 = vmatprep.subr.mxu1 %v3237_v0  ;;  %2796 = vmatprep.mubr.msk.f32.mxu1 %vm3238_vm0, %v3237_v0 }
0x13db   :  { %2789 = vmatpush3.msra.mxu1 %v3578_v37 }
0x13dc   :  { %2790 = vmatprep.subr.mxu1 %v3237_v0 }
0x13dd   :  { %2791 = vmatpush3.msra.mxu1 %v3581_v39 }
0x13de   :  { %2792 = vmatprep.subr.mxu1 %v3237_v0 }
0x13df   :  { %2793 = vmatpush3.msra.mxu1 %v3585_v40 }
0x13e0   :  { %2794 = vmatprep.subr.mxu1 %v3237_v0 }
0x13e1   :  { %2795 = vmatpush3.msra.mxu1 %v3589_v24 }
0x13e2   :  { %2810 = vmatprep.subr.mxu1 %v3237_v0 }
0x1491   :  { %v1175_v49 = vpop.f32.mrf.mxu1 }
0x1492   :  { %v1179_v50 = vadd.f32 %v1175_v49, %v3391_v30 }
0x1493   :  { %v2756_v7 = vpop.f32.mrf.mxu1 }
0x1494   :  { %v2496_v4 = vmul.f32 -1.442695, %v1179_v50 }
0x1499   :  { %v1440_v53 = vpop.f32.mrf.mxu1 }
0x149a   :  { %v1444_v54 = vadd.f32 %v1440_v53, %v1336_v12 }
0x149b   :  { %v2787_v26 = vpop.f32.mrf.mxu1 }
0x149c   :  { %v2506_v55 = vmul.f32 -1.442695, %v1444_v54 }
0x149e   :  { %2984 = vpow2.f32 %v2506_v55 }
0x149f   :  { %2986 = vtanh.f32 %v1444_v54 }
0x14ab   :  { %v2985_v56 = vpop.eup %2984 }
0x14ac   :  { %v1449_v57 = vadd.f32 1.0, %v2985_v56  ;;  %v2987_v58 = vpop.eup %2986 }
0x14ae   :  { %2988 = vrcp.f32 %v1449_v57  ;;  %v3678_v57 = vld [vmem:[#allocation6 + $0x38] sm:$0xff] }
0x14af   :  { %vm1211_vm12 = vcmp.gt.f32.partialorder %v3678_v57, 0.5 }
0x14bb   :  { %v2989_v60 = vpop.eup %2988 }
0x14bc   :  { %v1452_v30 = vsel %vm3395_vm4, %v2987_v58, %v2989_v60 }
0x14bd   :  { %1455 = vrot.lane.b32.xlu0 %v1452_v30, %s3239_s4  ;;  %v1453_v1 = vmul.f32 0.0, %v1452_v30 }
0x152f   :  { %v1456_v61 = vpop.permute.xlu0 %1455 }
0x1530   :  { %v1458_v62 = vmul.f32 %v1456_v61, %v1452_v30 }
0x1532   :  { %1460 = vrot.lane.b32.xlu1 %v1458_v62, %s3240_s7 }
0x15a4   :  { %v1461_v22 = vpop.permute.xlu1 %1460 }
0x15a5   :  { %v1463_v2 = vadd.f32 %v1461_v22, %v1453_v1 }
0x15a7   :  { %2990 = vtanh.f32 %v1463_v2 }
0x15a8   :  { %2992 = vpow2.f32 %v2496_v4 }
0x15b4   :  { %v2991_v3 = vpop.eup %2990 }
0x15b5   :  { %1466 = vrot.lane.b32.xlu0 %v2991_v3, %s3239_s4  ;;  %v2993_v8 = vpop.eup %2992 }
0x15b6   :  { %v1184_v10 = vadd.f32 1.0, %v2993_v8 }
0x15b8   :  { %2994 = vrcp.f32 %v1184_v10 }
0x15b9   :  { %1100 = vrot.lane.b32.xlu0 %v3574_v35, %s3241_s14  ;;  %2996 = vtanh.f32 %v1179_v50 }
0x15bd   :  { %1478 = vrot.lane.b32.xlu0 %v1463_v2, %s3241_s14 }
0x15c5   :  { %v2995_v14 = vpop.eup %2994 }
0x15c6   :  { %v2997_v17 = vpop.eup %2996 }
0x15c7   :  { %v1187_v19 = vsel %vm3395_vm4, %v2997_v17, %v2995_v14 }
0x1627   :  { %v1467_v11 = vpop.permute.xlu0 %1466 }
0x1628   :  { %v1469_v13 = vmul.f32 %v1467_v11, %v1452_v30 }
0x162a   :  { %1473 = vrot.lane.b32.xlu1 %v1469_v13, %s3240_s7 }
0x162b   :  { %v1101_v15 = vpop.permute.xlu0 %1100 }
0x162c   :  { %v1103_v18 = vsel %vm1093_vm11, %v1101_v15, %v3550_v63 }
0x162d   :  { %1189 = vrot.lane.b32.xlu0 %v1103_v18, %s3240_s7 }
0x162e   :  { %1194 = vrot.lane.b32.xlu1 %v1187_v19, %s3239_s4 }
0x162f   :  { %v1479_v20 = vpop.permute.xlu0 %1478 }
0x1630   :  { %v1481_v21 = vsel %vm386_vm5, %v1479_v20, 0.0 }
0x1631   :  { %1565 = vrot.lane.b32.xlu0 %v1481_v21, %s3240_s7 }
0x169c   :  { %v1474_v23 = vpop.permute.xlu1 %1473 }
0x169d   :  { %v3654_v25 = vsel %vm386_vm5, %v1474_v23, 0.0 }
0x169e   :  { %2797 = vmatmul.mubr.msk.f32.vlgmr.msra.gmra.mxu1 %vm156_vm1, %v3654_v25 }
0x169f   :  { %2811 = vmatpush3.msra.mxu1 %v3578_v37  ;;  %2818 = vmatprep.mubr.msk.f32.mxu1 %vm3238_vm0, %v3237_v0  ;;  %v1190_v43 = vpop.permute.xlu0 %1189 }
0x16a0   :  { %2812 = vmatprep.subr.mxu1 %v3237_v0  ;;  %v1195_v35 = vpop.permute.xlu1 %1194  ;;  %v1192_v48 = vmul.f32 %v1190_v43, %v1187_v19 }
0x16a1   :  { %2813 = vmatpush3.msra.mxu1 %v3581_v39  ;;  %v1197_v41 = vmul.f32 %v1195_v35, %v1187_v19 }
0x16a2   :  { %2814 = vmatprep.subr.mxu1 %v3237_v0 }
0x16a3   :  { %2815 = vmatpush3.msra.mxu1 %v3585_v40  ;;  %v1566_v51 = vpop.permute.xlu0 %1565 }
0x16a4   :  { %2816 = vmatprep.subr.mxu1 %v3237_v0 }
0x16a5   :  { %2817 = vmatpush3.msra.mxu1 %v3589_v24 }
0x16a6   :  { %2832 = vmatprep.subr.mxu1 %v3237_v0 }
0x175e   :  { %v1551_v63 = vpop.f32.mrf.mxu1 }
0x175f   :  { %v1555_v27 = vadd.f32 %v1551_v63, %v1341_v52 }
0x1760   :  { %v2798_v29 = vpop.f32.mrf.mxu1 }
0x1761   :  { %v2508_v31 = vmul.f32 -1.442695, %v1555_v27 }
0x1763   :  { %2998 = vpow2.f32 %v2508_v31 }
0x1764   :  { %3000 = vtanh.f32 %v1555_v27 }
0x1770   :  { %v2999_v32 = vpop.eup %2998 }
0x1771   :  { %v1560_v34 = vadd.f32 1.0, %v2999_v32  ;;  %v3001_v33 = vpop.eup %3000 }
0x1773   :  { %3002 = vrcp.f32 %v1560_v34 }
0x1780   :  { %v3003_v28 = vpop.eup %3002 }
0x1781   :  { %v1563_v36 = vsel %vm3395_vm4, %v3001_v33, %v3003_v28 }
0x1782   :  { %1570 = vrot.lane.b32.xlu1 %v1563_v36, %s3239_s4  ;;  %v1568_v12 = vmul.f32 %v1566_v51, %v1563_v36 }
0x1786   :  { %1199 = vrot.lane.b32.xlu1 %v1197_v41, %s3240_s7 }
0x17f4   :  { %v1571_v46 = vpop.permute.xlu1 %1570 }
0x17f5   :  { %v1573_v47 = vmul.f32 %v1571_v46, %v1563_v36 }
0x17f7   :  { %1575 = vrot.lane.b32.xlu1 %v1573_v47, %s3240_s7 }
0x17f8   :  { %v1200_v49 = vpop.permute.xlu1 %1199 }
0x17f9   :  { %v1202_v50 = vadd.f32 %v1200_v49, %v1192_v48 }
0x17fb   :  { %3004 = vtanh.f32 %v1202_v50 }
0x1808   :  { %v3005_v7 = vpop.eup %3004 }
0x1809   :  { %1205 = vrot.lane.b32.xlu0 %v3005_v7, %s3239_s4 }
0x1869   :  { %v1576_v53 = vpop.permute.xlu1 %1575 }
0x186a   :  { %v1578_v54 = vadd.f32 %v1576_v53, %v1568_v12 }
0x186c   :  { %3006 = vtanh.f32 %v1578_v54 }
0x1879   :  { %v3007_v26 = vpop.eup %3006 }
0x187a   :  { %1581 = vrot.lane.b32.xlu1 %v3007_v26, %s3239_s4 }
0x187b   :  { %v1206_v55 = vpop.permute.xlu0 %1205 }
0x187c   :  { %v1208_v56 = vmul.f32 %v1206_v55, %v1187_v19 }
0x187e   :  { %1213 = vrot.lane.b32.xlu0 %v1208_v56, %s3240_s7 }
0x1882   :  { %1593 = vrot.lane.b32.xlu0 %v1578_v54, %s3241_s14 }
0x18ec   :  { %v1582_v58 = vpop.permute.xlu1 %1581 }
0x18ed   :  { %v1584_v60 = vmul.f32 %v1582_v58, %v1563_v36 }
0x18ef   :  { %1588 = vrot.lane.b32.xlu1 %v1584_v60, %s3240_s7 }
0x18f0   :  { %v1214_v30 = vpop.permute.xlu0 %1213 }
0x18f1   :  { %v1216_v61 = vsel %vm1211_vm12, %v1214_v30, %v3601_v5  ;;  %v1345_v5 = vpop.f32.mrf.mxu0 }
0x18f2   :  { %1218 = vst.msk [vmem:[#allocation2 + $0x38] sm:$0xff] %vm156_vm1, %v1216_v61  ;;  %v1346_v13 = vadd.f32 %v3630_v9, %v1345_v5 }
0x18f3   :  { %v3706_v4 = vpop.f32.mrf.mxu0 }
0x18f4   :  { %v1594_v62 = vpop.permute.xlu0 %1593  ;;  %v1361_v38 = vadd.f32 %v3706_v4, %v3630_v9 }
0x18f5   :  { %v1596_v1 = vsel %vm503_vm6, %v1594_v62, %v1481_v21  ;;  %v3708_v8 = vpop.f32.mrf.mxu0 }
0x18f6   :  { %1680 = vrot.lane.b32.xlu0 %v1596_v1, %s3240_s7  ;;  %v1356_v6 = vadd.f32 %v3630_v9, %v3708_v8 }
0x18f9   :  { %v1236_v22 = vld [vmem:[#allocation2 + $0x38] sm:$0xff] }
0x18fa   :  { %2775 = vmatmul.mubr.msk.f32.gmra.mxu0 %vm156_vm1, %v1236_v22 }
0x18fb   :  { %2807 = vmatprep.mubr.msk.f32.mxu0 %vm3238_vm0, %v3237_v0 }
0x1961   :  { %v1589_v2 = vpop.permute.xlu1 %1588 }
0x1962   :  { %v1591_v3 = vsel %vm503_vm6, %v1589_v2, %v3654_v25 }
0x1963   :  { %2808 = vmatmul.mubr.msk.f32.vlgmr.msra.gmra.mxu0 %vm156_vm1, %v1591_v3 }
0x1964   :  { %2822 = vmatpush3.msra.mxu0 %v3578_v37  ;;  %2829 = vmatprep.mubr.msk.f32.mxu0 %vm3238_vm0, %v3237_v0 }
0x1965   :  { %2823 = vmatprep.subr.mxu0 %v3237_v0 }
0x1966   :  { %2824 = vmatpush3.msra.mxu0 %v3581_v39 }
0x1967   :  { %2825 = vmatprep.subr.mxu0 %v3237_v0 }
0x1968   :  { %2826 = vmatpush3.msra.mxu0 %v3585_v40  ;;  %v1681_v27 = vpop.permute.xlu0 %1680 }
0x1969   :  { %2827 = vmatprep.subr.mxu0 %v3237_v0 }
0x196a   :  { %2828 = vmatpush3.msra.mxu0 %v3589_v24 }
0x196b   :  { %2843 = vmatprep.subr.mxu0 %v3237_v0 }
0x19ba   :  { %v3710_v10 = vpop.f32.mrf.mxu0 }
0x19bc   :  { %v3712_v11 = vpop.f32.mrf.mxu0 }
0x1a23   :  { %v1666_v14 = vpop.f32.mrf.mxu0 }
0x1a24   :  { %v1670_v15 = vadd.f32 %v1666_v14, %v1346_v13 }
0x1a25   :  { %v2809_v17 = vpop.f32.mrf.mxu0 }
0x1a26   :  { %v2510_v18 = vmul.f32 -1.442695, %v1670_v15 }
0x1a28   :  { %3008 = vpow2.f32 %v2510_v18 }
0x1a29   :  { %3010 = vtanh.f32 %v1670_v15 }
0x1a35   :  { %v3009_v19 = vpop.eup %3008 }
0x1a36   :  { %v1675_v20 = vadd.f32 1.0, %v3009_v19  ;;  %v3011_v21 = vpop.eup %3010 }
0x1a38   :  { %3012 = vrcp.f32 %v1675_v20 }
0x1a45   :  { %v3013_v23 = vpop.eup %3012 }
0x1a46   :  { %v1678_v25 = vsel %vm3395_vm4, %v3011_v21, %v3013_v23 }
0x1a47   :  { %1685 = vrot.lane.b32.xlu1 %v1678_v25, %s3239_s4  ;;  %v1683_v29 = vmul.f32 %v1681_v27, %v1678_v25 }
0x1ab9   :  { %v1686_v52 = vpop.permute.xlu1 %1685 }
0x1aba   :  { %v1688_v63 = vmul.f32 %v1686_v52, %v1678_v25 }
0x1abc   :  { %1690 = vrot.lane.b32.xlu1 %v1688_v63, %s3240_s7 }
0x1b2e   :  { %v1691_v31 = vpop.permute.xlu1 %1690 }
0x1b2f   :  { %v1693_v32 = vadd.f32 %v1691_v31, %v1683_v29 }
0x1b31   :  { %3014 = vtanh.f32 %v1693_v32 }
0x1b3e   :  { %v3015_v34 = vpop.eup %3014 }
0x1b3f   :  { %1696 = vrot.lane.b32.xlu0 %v3015_v34, %s3239_s4 }
0x1b43   :  { %1708 = vrot.lane.b32.xlu0 %v1693_v32, %s3241_s14 }
0x1bb1   :  { %v1697_v33 = vpop.permute.xlu0 %1696 }
0x1bb2   :  { %v1699_v28 = vmul.f32 %v1697_v33, %v1678_v25 }
0x1bb4   :  { %1703 = vrot.lane.b32.xlu1 %v1699_v28, %s3240_s7 }
0x1bb5   :  { %v1709_v35 = vpop.permute.xlu0 %1708 }
0x1bb6   :  { %v1711_v36 = vsel %vm621_vm7, %v1709_v35, %v1596_v1 }
0x1bb7   :  { %1795 = vrot.lane.b32.xlu0 %v1711_v36, %s3240_s7 }
0x1c26   :  { %v1704_v41 = vpop.permute.xlu1 %1703 }
0x1c27   :  { %v1706_v43 = vsel %vm621_vm7, %v1704_v41, %v1591_v3 }
0x1c28   :  { %2819 = vmatmul.mubr.msk.f32.vlgmr.msra.gmra.mxu1 %vm156_vm1, %v1706_v43 }
0x1c29   :  { %2833 = vmatpush3.msra.mxu1 %v3578_v37  ;;  %2840 = vmatprep.mubr.msk.f32.mxu1 %vm3238_vm0, %v3237_v0  ;;  %v1796_v55 = vpop.permute.xlu0 %1795 }
0x1c2a   :  { %2834 = vmatprep.subr.mxu1 %v3237_v0 }
0x1c2b   :  { %2835 = vmatpush3.msra.mxu1 %v3581_v39 }
0x1c2c   :  { %2836 = vmatprep.subr.mxu1 %v3237_v0 }
0x1c2d   :  { %2837 = vmatpush3.msra.mxu1 %v3585_v40 }
0x1c2e   :  { %2838 = vmatprep.subr.mxu1 %v3237_v0 }
0x1c2f   :  { %2839 = vmatpush3.msra.mxu1 %v3589_v24 }
0x1c30   :  { %2854 = vmatprep.subr.mxu1 %v3237_v0 }
0x1ce8   :  { %v1781_v46 = vpop.f32.mrf.mxu1 }
0x1ce9   :  { %v1785_v47 = vadd.f32 %v1781_v46, %v1351_v45 }
0x1cea   :  { %v2820_v48 = vpop.f32.mrf.mxu1 }
0x1ceb   :  { %v2512_v49 = vmul.f32 -1.442695, %v1785_v47 }
0x1ced   :  { %3016 = vpow2.f32 %v2512_v49 }
0x1cee   :  { %3018 = vtanh.f32 %v1785_v47 }
0x1cfa   :  { %v3017_v50 = vpop.eup %3016 }
0x1cfb   :  { %v1790_v7 = vadd.f32 1.0, %v3017_v50  ;;  %v3019_v51 = vpop.eup %3018 }
0x1cfd   :  { %3020 = vrcp.f32 %v1790_v7 }
0x1d0a   :  { %v3021_v12 = vpop.eup %3020 }
0x1d0b   :  { %v1793_v53 = vsel %vm3395_vm4, %v3019_v51, %v3021_v12 }
0x1d0c   :  { %1800 = vrot.lane.b32.xlu1 %v1793_v53, %s3239_s4  ;;  %v1798_v56 = vmul.f32 %v1796_v55, %v1793_v53 }
0x1d7e   :  { %v1801_v54 = vpop.permute.xlu1 %1800 }
0x1d7f   :  { %v1803_v26 = vmul.f32 %v1801_v54, %v1793_v53 }
0x1d81   :  { %1805 = vrot.lane.b32.xlu1 %v1803_v26, %s3240_s7 }
0x1df3   :  { %v1806_v58 = vpop.permute.xlu1 %1805 }
0x1df4   :  { %v1808_v60 = vadd.f32 %v1806_v58, %v1798_v56  ;;  %v1366_v56 = vadd.f32 %v3630_v9, %v3712_v11 }
0x1df6   :  { %3022 = vtanh.f32 %v1808_v60 }
0x1e03   :  { %v3023_v30 = vpop.eup %3022 }
0x1e04   :  { %1811 = vrot.lane.b32.xlu0 %v3023_v30, %s3239_s4 }
0x1e08   :  { %1823 = vrot.lane.b32.xlu0 %v1808_v60, %s3241_s14 }
0x1e76   :  { %v1812_v61 = vpop.permute.xlu0 %1811 }
0x1e77   :  { %v1814_v62 = vmul.f32 %v1812_v61, %v1793_v53 }
0x1e79   :  { %1818 = vrot.lane.b32.xlu1 %v1814_v62, %s3240_s7 }
0x1e7a   :  { %v1824_v1 = vpop.permute.xlu0 %1823 }
0x1e7b   :  { %v1826_v22 = vsel %vm739_vm8, %v1824_v1, %v1711_v36 }
0x1e7c   :  { %1910 = vrot.lane.b32.xlu0 %v1826_v22, %s3240_s7 }
0x1eeb   :  { %v1819_v2 = vpop.permute.xlu1 %1818 }
0x1eec   :  { %v1821_v3 = vsel %vm739_vm8, %v1819_v2, %v1706_v43 }
0x1eed   :  { %2830 = vmatmul.mubr.msk.f32.vlgmr.msra.gmra.mxu0 %vm156_vm1, %v1821_v3 }
0x1eee   :  { %2844 = vmatpush3.msra.mxu0 %v3578_v37  ;;  %2851 = vmatprep.mubr.msk.f32.mxu0 %vm3238_vm0, %v3237_v0  ;;  %v1911_v8 = vpop.permute.xlu0 %1910 }
0x1eef   :  { %2845 = vmatprep.subr.mxu0 %v3237_v0 }
0x1ef0   :  { %2846 = vmatpush3.msra.mxu0 %v3581_v39 }
0x1ef1   :  { %2847 = vmatprep.subr.mxu0 %v3237_v0 }
0x1ef2   :  { %2848 = vmatpush3.msra.mxu0 %v3585_v40 }
0x1ef3   :  { %2849 = vmatprep.subr.mxu0 %v3237_v0 }
0x1ef4   :  { %2850 = vmatpush3.msra.mxu0 %v3589_v24 }
0x1ef5   :  { %2865 = vmatprep.subr.mxu0 %v3237_v0 }
0x1fad   :  { %v1896_v16 = vpop.f32.mrf.mxu0 }
0x1fae   :  { %v1900_v5 = vadd.f32 %v1896_v16, %v1356_v6 }
0x1faf   :  { %v2831_v13 = vpop.f32.mrf.mxu0 }
0x1fb0   :  { %v2514_v14 = vmul.f32 -1.442695, %v1900_v5 }
0x1fb2   :  { %3024 = vpow2.f32 %v2514_v14 }
0x1fb3   :  { %3026 = vtanh.f32 %v1900_v5 }
0x1fbf   :  { %v3025_v15 = vpop.eup %3024 }
0x1fc0   :  { %v1905_v17 = vadd.f32 1.0, %v3025_v15  ;;  %v3027_v18 = vpop.eup %3026 }
0x1fc2   :  { %3028 = vrcp.f32 %v1905_v17 }
0x1fcf   :  { %v3029_v19 = vpop.eup %3028 }
0x1fd0   :  { %v1908_v20 = vsel %vm3395_vm4, %v3027_v18, %v3029_v19 }
0x1fd1   :  { %1915 = vrot.lane.b32.xlu1 %v1908_v20, %s3239_s4  ;;  %v1913_v25 = vmul.f32 %v1911_v8, %v1908_v20 }
0x2043   :  { %v1916_v21 = vpop.permute.xlu1 %1915 }
0x2044   :  { %v1918_v23 = vmul.f32 %v1916_v21, %v1908_v20 }
0x2046   :  { %1920 = vrot.lane.b32.xlu1 %v1918_v23, %s3240_s7  ;;  %v1371_v23 = vadd.f32 %v3710_v10, %v3630_v9 }
0x20b8   :  { %v1921_v52 = vpop.permute.xlu1 %1920 }
0x20b9   :  { %v1923_v63 = vadd.f32 %v1921_v52, %v1913_v25 }
0x20bb   :  { %3030 = vtanh.f32 %v1923_v63 }
0x20c8   :  { %v3031_v27 = vpop.eup %3030 }
0x20c9   :  { %1926 = vrot.lane.b32.xlu0 %v3031_v27, %s3239_s4 }
0x20cd   :  { %1938 = vrot.lane.b32.xlu0 %v1923_v63, %s3241_s14 }
0x213b   :  { %v1927_v29 = vpop.permute.xlu0 %1926 }
0x213c   :  { %v1929_v31 = vmul.f32 %v1927_v29, %v1908_v20 }
0x213e   :  { %1933 = vrot.lane.b32.xlu1 %v1929_v31, %s3240_s7 }
0x213f   :  { %v1939_v32 = vpop.permute.xlu0 %1938 }
0x2140   :  { %v1941_v34 = vsel %vm857_vm9, %v1939_v32, %v1826_v22 }
0x2141   :  { %2025 = vrot.lane.b32.xlu0 %v1941_v34, %s3240_s7 }
0x21b0   :  { %v1934_v33 = vpop.permute.xlu1 %1933 }
0x21b1   :  { %v1936_v28 = vsel %vm857_vm9, %v1934_v33, %v1821_v3 }
0x21b2   :  { %2841 = vmatmul.mubr.msk.f32.vlgmr.msra.gmra.mxu1 %vm156_vm1, %v1936_v28 }
0x21b3   :  { %2855 = vmatpush3.msra.mxu1 %v3578_v37  ;;  %2862 = vmatprep.mubr.msk.f32.mxu1 %vm3238_vm0, %v3237_v0  ;;  %v2026_v4 = vpop.permute.xlu0 %2025 }
0x21b4   :  { %2856 = vmatprep.subr.mxu1 %v3237_v0 }
0x21b5   :  { %2857 = vmatpush3.msra.mxu1 %v3581_v39 }
0x21b6   :  { %2858 = vmatprep.subr.mxu1 %v3237_v0 }
0x21b7   :  { %2859 = vmatpush3.msra.mxu1 %v3585_v40 }
0x21b8   :  { %2860 = vmatprep.subr.mxu1 %v3237_v0 }
0x21b9   :  { %2861 = vmatpush3.msra.mxu1 %v3589_v24 }
0x21ba   :  { %2900 = vmatprep.subr.mxu1 %v3237_v0 }
0x2272   :  { %v2011_v37 = vpop.f32.mrf.mxu1 }
0x2273   :  { %v2015_v35 = vadd.f32 %v2011_v37, %v1361_v38  ;;  %v2302_v37 = vld [vmem:[#allocation14 + $0x78] sm:$0xff] }
0x2274   :  { %v2842_v36 = vpop.f32.mrf.mxu1 }
0x2275   :  { %v2516_v41 = vmul.f32 -1.442695, %v2015_v35  ;;  %v2299_v36 = vld [vmem:[#allocation14 + $0x60] sm:$0xff] }
0x2277   :  { %3032 = vpow2.f32 %v2516_v41  ;;  %v2285_v41 = vld [vmem:[#allocation12 + $0x18] sm:$0xff] }
0x2278   :  { %3034 = vtanh.f32 %v2015_v35  ;;  %v2301_v35 = vld [vmem:[#allocation14 + $0x70] sm:$0xff] }
0x2284   :  { %v3033_v43 = vpop.eup %3032 }
0x2285   :  { %v2020_v39 = vadd.f32 1.0, %v3033_v43  ;;  %v3035_v45 = vpop.eup %3034  ;;  %v2284_v43 = vld [vmem:[#allocation12 + $0x10] sm:$0xff] }
0x2287   :  { %3036 = vrcp.f32 %v2020_v39  ;;  %v2298_v39 = vld [vmem:[#allocation14 + $0x58] sm:$0xff] }
0x2294   :  { %v3037_v40 = vpop.eup %3036 }
0x2295   :  { %v2023_v46 = vsel %vm3395_vm4, %v3035_v45, %v3037_v40  ;;  %v2283_v45 = vld [vmem:[#allocation12 + $0x8] sm:$0xff]  ;;  %v2297_v40 = vld [vmem:[#allocation14 + $0x50] sm:$0xff] }
0x2296   :  { %2030 = vrot.lane.b32.xlu1 %v2023_v46, %s3239_s4  ;;  %v2028_v48 = vmul.f32 %v2026_v4, %v2023_v46  ;;  %v2294_v4 = vld [vmem:[#allocation14 + $0x38] sm:$0xff] }
0x2308   :  { %v2031_v24 = vpop.permute.xlu1 %2030 }
0x2309   :  { %v2033_v47 = vmul.f32 %v2031_v24, %v2023_v46  ;;  %v2296_v24 = vld [vmem:[#allocation14 + $0x48] sm:$0xff] }
0x230b   :  { %2035 = vrot.lane.b32.xlu1 %v2033_v47, %s3240_s7  ;;  %v2295_v47 = vld [vmem:[#allocation14 + $0x40] sm:$0xff] }
0x237d   :  { %v2036_v49 = vpop.permute.xlu1 %2035 }
0x237e   :  { %v2038_v50 = vadd.f32 %v2036_v49, %v2028_v48  ;;  %v2293_v48 = vld [vmem:[#allocation14 + $0x30] sm:$0xff]  ;;  %v2292_v49 = vld [vmem:[#allocation14 + $0x28] sm:$0xff] }
0x2380   :  { %3038 = vtanh.f32 %v2038_v50 }
0x238d   :  { %v3039_v7 = vpop.eup %3038 }
0x238e   :  { %2041 = vrot.lane.b32.xlu0 %v3039_v7, %s3239_s4  ;;  %v2290_v7 = vld [vmem:[#allocation14 + $0x18] sm:$0xff] }
0x2392   :  { %2053 = vrot.lane.b32.xlu0 %v2038_v50, %s3241_s14  ;;  %v2291_v50 = vld [vmem:[#allocation14 + $0x20] sm:$0xff] }
0x2400   :  { %v2042_v51 = vpop.permute.xlu0 %2041 }
0x2401   :  { %v2044_v12 = vmul.f32 %v2042_v51, %v2023_v46  ;;  %v2289_v51 = vld [vmem:[#allocation14 + $0x10] sm:$0xff] }
0x2403   :  { %2048 = vrot.lane.b32.xlu1 %v2044_v12, %s3240_s7  ;;  %v2288_v12 = vld [vmem:[#allocation14 + $0x8] sm:$0xff] }
0x2404   :  { %v2054_v53 = vpop.permute.xlu0 %2053 }
0x2405   :  { %v2056_v54 = vsel %vm975_vm10, %v2054_v53, %v1941_v34  ;;  %v2287_v53 = vld [vmem:[#allocation14] sm:$0xff] }
0x2406   :  { %2140 = vrot.lane.b32.xlu0 %v2056_v54, %s3240_s7 }
0x2475   :  { %v2049_v26 = vpop.permute.xlu1 %2048 }
0x2476   :  { %v2051_v55 = vsel %vm975_vm10, %v2049_v26, %v1936_v28  ;;  %v2282_v26 = vld [vmem:[#allocation12] sm:$0xff] }
0x2477   :  { %2852 = vmatmul.mubr.msk.f32.vlgmr.msra.gmra.mxu0 %vm156_vm1, %v2051_v55 }
0x2478   :  { %2897 = vmatprep.mubr.msk.f32.mxu0 %vm3238_vm0, %v3237_v0  ;;  %v2141_v11 = vpop.permute.xlu0 %2140  ;;  %2866 = vmatpush3.msra.mxu0 %v2302_v37 }
0x2479   :  { %2867 = vmatprep.subr.mxu0 %v3237_v0 }
0x247a   :  { %2868 = vmatpush3.msra.mxu0 %v2301_v35 }
0x247b   :  { %2869 = vmatprep.subr.mxu0 %v3237_v0 }
0x247c   :  { %2870 = vmatpush3.msra.mxu0 %v2300_v42 }
0x247d   :  { %2871 = vmatprep.subr.mxu0 %v3237_v0 }
0x247e   :  { %2872 = vmatpush3.msra.mxu0 %v2299_v36 }
0x247f   :  { %2873 = vmatprep.subr.mxu0 %v3237_v0 }
0x2480   :  { %2874 = vmatpush3.msra.mxu0 %v2298_v39 }
0x2481   :  { %2875 = vmatprep.subr.mxu0 %v3237_v0 }
0x2482   :  { %2876 = vmatpush3.msra.mxu0 %v2297_v40 }
0x2483   :  { %2877 = vmatprep.subr.mxu0 %v3237_v0 }
0x2484   :  { %2878 = vmatpush3.msra.mxu0 %v2296_v24 }
0x2485   :  { %2879 = vmatprep.subr.mxu0 %v3237_v0 }
0x2486   :  { %2880 = vmatpush3.msra.mxu0 %v2295_v47 }
0x2487   :  { %2881 = vmatprep.subr.mxu0 %v3237_v0 }
0x2488   :  { %2882 = vmatpush3.msra.mxu0 %v2294_v4 }
0x2489   :  { %2883 = vmatprep.subr.mxu0 %v3237_v0 }
0x248a   :  { %2884 = vmatpush3.msra.mxu0 %v2293_v48 }
0x248b   :  { %2885 = vmatprep.subr.mxu0 %v3237_v0 }
0x248c   :  { %2886 = vmatpush3.msra.mxu0 %v2292_v49 }
0x248d   :  { %2887 = vmatprep.subr.mxu0 %v3237_v0 }
0x248e   :  { %2888 = vmatpush3.msra.mxu0 %v2291_v50 }
0x248f   :  { %2889 = vmatprep.subr.mxu0 %v3237_v0 }
0x2490   :  { %2890 = vmatpush3.msra.mxu0 %v2290_v7 }
0x2491   :  { %2891 = vmatprep.subr.mxu0 %v3237_v0 }
0x2492   :  { %2892 = vmatpush3.msra.mxu0 %v2289_v51 }
0x2493   :  { %2893 = vmatprep.subr.mxu0 %v3237_v0 }
0x2494   :  { %2894 = vmatpush3.msra.mxu0 %v2288_v12 }
0x2495   :  { %2895 = vmatprep.subr.mxu0 %v3237_v0 }
0x2496   :  { %2896 = vmatpush3.msra.mxu0 %v2287_v53 }
0x2537   :  { %v2126_v58 = vpop.f32.mrf.mxu0 }
0x2538   :  { %v2130_v60 = vadd.f32 %v2126_v58, %v1366_v56 }
0x2539   :  { %v2853_v30 = vpop.f32.mrf.mxu0 }
0x253a   :  { %v2518_v61 = vmul.f32 -1.442695, %v2130_v60 }
0x253c   :  { %3040 = vpow2.f32 %v2518_v61 }
0x253d   :  { %3042 = vtanh.f32 %v2130_v60 }
0x2549   :  { %v3041_v62 = vpop.eup %3040 }
0x254a   :  { %v2135_v1 = vadd.f32 1.0, %v3041_v62  ;;  %v3043_v22 = vpop.eup %3042  ;;  %v2522_v62 = vld [vmem:[%s3877_s8] ss:$0 sm:$0xff] }
0x254c   :  { %3044 = vrcp.f32 %v2135_v1 }
0x2559   :  { %v3045_v59 = vpop.eup %3044 }
0x255a   :  { %v2138_v2 = vsel %vm3395_vm4, %v3043_v22, %v3045_v59 }
0x255b   :  { %2145 = vrot.lane.b32.xlu1 %v2138_v2, %s3239_s4  ;;  %v2143_v16 = vmul.f32 %v2141_v11, %v2138_v2 }
0x25cd   :  { %v2146_v3 = vpop.permute.xlu1 %2145 }
0x25ce   :  { %v2148_v6 = vmul.f32 %v2146_v3, %v2138_v2 }
0x25d0   :  { %2150 = vrot.lane.b32.xlu1 %v2148_v6, %s3240_s7 }
0x2642   :  { %v2151_v5 = vpop.permute.xlu1 %2150 }
0x2643   :  { %v2153_v13 = vadd.f32 %v2151_v5, %v2143_v16 }
0x2645   :  { %3046 = vtanh.f32 %v2153_v13 }
0x2652   :  { %v3047_v14 = vpop.eup %3046 }
0x2653   :  { %2156 = vrot.lane.b32.xlu0 %v3047_v14, %s3239_s4 }
0x2657   :  { %2168 = vrot.lane.b32.xlu0 %v2153_v13, %s3241_s14 }
0x26c5   :  { %v2157_v15 = vpop.permute.xlu0 %2156 }
0x26c6   :  { %v2159_v17 = vmul.f32 %v2157_v15, %v2138_v2 }
0x26c8   :  { %2163 = vrot.lane.b32.xlu1 %v2159_v17, %s3240_s7 }
0x26c9   :  { %v2169_v18 = vpop.permute.xlu0 %2168 }
0x26ca   :  { %v2171_v19 = vsel %vm1093_vm11, %v2169_v18, %v2056_v54  ;;  %v2286_v54 = vld [vmem:[%s3874_s5] sm:$0xff] }
0x26cb   :  { %2255 = vrot.lane.b32.xlu0 %v2171_v19, %s3240_s7  ;;  %2898 = vmatmul.mubr.f32.vlgmr.msra.gmra.mxu0 %v2286_v54 }
0x273a   :  { %v2164_v20 = vpop.permute.xlu1 %2163 }
0x273b   :  { %v3818_v21 = vsel %vm1093_vm11, %v2164_v20, %v2051_v55 }
0x273c   :  { %2863 = vmatmul.mubr.msk.f32.vlgmr.msra.gmra.mxu1 %vm156_vm1, %v3818_v21 }
0x273d   :  { %2908 = vmatprep.mubr.msk.f32.mxu1 %vm3238_vm0, %v3237_v0  ;;  %v2256_v10 = vpop.permute.xlu0 %2255  ;;  %2901 = vmatpush3.msra.mxu1 %v2285_v41 }
0x273e   :  { %2902 = vmatprep.subr.mxu1 %v3237_v0 }
0x273f   :  { %2903 = vmatpush3.msra.mxu1 %v2284_v43 }
0x2740   :  { %2904 = vmatprep.subr.mxu1 %v3237_v0 }
0x2741   :  { %2905 = vmatpush3.msra.mxu1 %v2283_v45 }
0x2742   :  { %2906 = vmatprep.subr.mxu1 %v3237_v0 }
0x2743   :  { %2907 = vmatpush3.msra.mxu1 %v2282_v26 }
0x278b   :  { %v2369_v0 = vpop.f32.mrf.mxu0 }
0x278d   :  { %v2899_v30 = vpop.f32.mrf.mxu0 }
0x27fc   :  { %v2241_v8 = vpop.f32.mrf.mxu1 }
0x27fd   :  { %v2245_v25 = vadd.f32 %v2241_v8, %v1371_v23 }
0x27fe   :  { %v2864_v52 = vpop.f32.mrf.mxu1 }
0x27ff   :  { %v2520_v63 = vmul.f32 -1.442695, %v2245_v25 }
0x2801   :  { %3048 = vpow2.f32 %v2520_v63 }
0x2802   :  { %3050 = vtanh.f32 %v2245_v25 }
0x280e   :  { %v3049_v27 = vpop.eup %3048 }
0x280f   :  { %v2250_v29 = vadd.f32 1.0, %v3049_v27  ;;  %v3051_v44 = vpop.eup %3050 }
0x2811   :  { %3052 = vrcp.f32 %v2250_v29 }
0x281e   :  { %v3053_v31 = vpop.eup %3052 }
0x281f   :  { %v3828_v32 = vsel %vm3395_vm4, %v3051_v44, %v3053_v31 }
0x2820   :  { %2260 = vrot.lane.b32.xlu1 %v3828_v32, %s3239_s4  ;;  %v2258_v33 = vmul.f32 %v2256_v10, %v3828_v32 }
0x2892   :  { %v2261_v34 = vpop.permute.xlu1 %2260 }
0x2893   :  { %v2263_v9 = vmul.f32 %v2261_v34, %v3828_v32 }
0x2895   :  { %2265 = vrot.lane.b32.xlu1 %v2263_v9, %s3240_s7 }
0x2907   :  { %v2266_v28 = vpop.permute.xlu1 %2265 }
0x2908   :  { %v2268_v38 = vadd.f32 %v2266_v28, %v2258_v33 }
0x290a   :  { %3054 = vtanh.f32 %v2268_v38 }
0x2917   :  { %v3055_v46 = vpop.eup %3054 }
0x2918   :  { %2271 = vrot.lane.b32.xlu0 %v3055_v46, %s3239_s4 }
0x298a   :  { %v2272_v55 = vpop.permute.xlu0 %2271 }
0x298b   :  { %v2274_v56 = vmul.f32 %v2272_v55, %v3828_v32 }
0x298d   :  { %2278 = vrot.lane.b32.xlu1 %v2274_v56, %s3240_s7 }
0x29ff   :  { %v2279_v58 = vpop.permute.xlu1 %2278 }
0x2a00   :  { %v2281_v60 = vsel %vm1211_vm12, %v2279_v58, %v3818_v21 }
0x2a01   :  { %2909 = vmatmul.mubr.msk.f32.vlgmr.msra.gmra.mxu1 %vm156_vm1, %v2281_v60 }
0x2ac1   :  { %v2442_v61 = vpop.f32.mrf.mxu1 }
0x2ac2   :  { %v2443_v1 = vadd.f32 %v2442_v61, %v2369_v0 }
0x2ac3   :  { %v2910_v22 = vpop.f32.mrf.mxu1 }
0x2ac4   :  { %v2453_v59 = vadd.f32 %v2522_v62, %v2443_v1 }
0x2ac6   :  { %2454 = vst [vmem:[#allocation15] sm:$0xff] %v2453_v59 }
0x2ac7   :  { %3207 = shalt.err (!%p3204_p11)
}
0x2ac8   :  { %2464 = dma.vmem_to_hbm [thread:$0]  %s2462_s26, 128, %s3878_s9, [#allocation5]  }
0x2ac9   :  { %3224 = dma.done.wait [#allocation5], 128  }
0x2aca   :  { %3225 = vsyncadd [#allocation5], 4294967168 }
0x2acb   :  { %2468 = vsyncpa [#allocation4], 1 }
0x2acc   :  { %2469 = vsyncpa [#allocation7], 1 }
0x2acd   :  { %2470 = vsyncpa [#allocation10], 1 }
0x2ace   :  { %2471 = vsyncpa [#allocation13], 1 }
0x2acf   :  { %2472 = vsyncpa [#allocation5], 1 }

</bundles_post_ra>
